<compile_context>
chip_gen: v5e
topology: v5e:2x2
jax: 0.10.0
libtpu: 0.0.40
codegen_flags: <defaults>
</compile_context>

<pallas_src>
import functools

import jax
import jax.numpy as jnp
from jax.experimental import pallas as pl
from jax.experimental.pallas import tpu as pltpu

HIDDEN = 128
LATENT = 128
LANE = 128
ROW_GRANULE = 16          # batch-tile granularity (safe for bf16 (16,128) tiles)


def _round_up(n, m):
    return ((n + m - 1) // m) * m


def _head_layout(out_dim):
    """Lane layout of the fused mu|std head -> (std_offset, head_width).

    If both heads fit in one 128-lane slot (out_dim <= 64): mu in lanes
    [0, 64), std in [64, 128).  Otherwise each head gets its own 128-aligned
    slot and the split is 128-lane aligned (mask-free kernel path).
    """
    if out_dim <= 64:
        return 64, 128
    slot = _round_up(out_dim, LANE)
    return slot, 2 * slot


def _softplus(z):
    # PyTorch Softplus(beta=1, threshold=20): z if z > 20 else log(1 + exp(z))
    return jnp.where(z > 20.0, z, jnp.log1p(jnp.exp(jnp.minimum(z, 20.0))))


def actor_kernel(x_ref, w1_ref, w2_ref, w3_ref, wh_ref, bias_ref, out_ref,
                 *, std_off):
    # Fused bias vector; all slice offsets are 128-lane aligned -> free views.
    b1 = bias_ref[:, 0:HIDDEN]
    b2 = bias_ref[:, HIDDEN:2 * HIDDEN]
    b3 = bias_ref[:, 2 * HIDDEN:2 * HIDDEN + LATENT]
    bh = bias_ref[:, 2 * HIDDEN + LATENT:]

    # x arrives f32 (cast fused into kernel); MXU operands bf16, f32 accumulate,
    # elementwise stays f32 (safe on v5e's f32-only VPU/EUP).
    x = x_ref[...].astype(jnp.bfloat16)

    h = jnp.dot(x, w1_ref[...], preferred_element_type=jnp.float32) + b1
    h = jnp.maximum(h, 0.0)
    h = jnp.dot(h.astype(jnp.bfloat16), w2_ref[...],
                preferred_element_type=jnp.float32) + b2
    h = jnp.maximum(h, 0.0)
    h = jnp.dot(h.astype(jnp.bfloat16), w3_ref[...],
                preferred_element_type=jnp.float32) + b3
    latent = jnp.maximum(h, 0.0)

    # Fused heads: one matmul; mu in lanes [0, std_off), std pre-activation in
    # lanes [std_off, head_width).
    y = jnp.dot(latent.astype(jnp.bfloat16), wh_ref[...],
                preferred_element_type=jnp.float32) + bh

    if std_off % LANE == 0:
        # 128-lane aligned split: static slices, no mask/relayout, softplus
        # touches only the std half.
        out_ref[:, :std_off] = y[:, :std_off].astype(out_ref.dtype)
        out_ref[:, std_off:] = _softplus(y[:, std_off:]).astype(out_ref.dtype)
    else:
        # Both heads share a single 128-lane slot (split at lane 64): one
        # cheap VPU lane mask; softplus still limited to 128 lanes total.
        col = jax.lax.broadcasted_iota(jnp.int32, y.shape, 1)
        out_ref[...] = jnp.where(col < std_off, y,
                                 _softplus(y)).astype(out_ref.dtype)


def pack_params(params):
    """One-time packing: fuse/pad heads, fuse biases, cast MXU weights to bf16."""
    out_dim = params["wmu"].shape[1]
    latent_dim = params["wmu"].shape[0]
    std_off, head_w = _head_layout(out_dim)

    wh = jnp.zeros((latent_dim, head_w), jnp.float32)
    wh = wh.at[:, :out_dim].set(params["wmu"])
    wh = wh.at[:, std_off:std_off + out_dim].set(params["wstd"])

    bh = jnp.zeros((head_w,), jnp.float32)
    bh = bh.at[:out_dim].set(params["bmu"][0])
    bh = bh.at[std_off:std_off + out_dim].set(params["bstd"][0])

    bias = jnp.concatenate(
        [params["b1"][0], params["b2"][0], params["b3"][0], bh])[None, :]

    return dict(
        w1=params["w1"].astype(jnp.bfloat16),
        w2=params["w2"].astype(jnp.bfloat16),
        w3=params["w3"].astype(jnp.bfloat16),
        wh=wh.astype(jnp.bfloat16),
        bias=bias,                         # f32, lane-dense, one input
    )


@functools.partial(jax.jit, static_argnames=("out_dim", "block_b", "min_tiles"))
def actor_forward(x, packed, *, out_dim, block_b=512, min_tiles=1):
    """x: [B, input_dim] f32.  Returns (mu, std), each [B, out_dim] f32.

    min_tiles: set >=2 on v7x so dimension_semantics=("parallel",) can shard
    batch tiles across both TensorCores; leave at 1 on v5e/v6e (single TC ->
    the single largest tile wins).
    """
    B, d_in = x.shape
    std_off, head_w = _head_layout(out_dim)

    # Batch tile: biggest tile (fewest ~0.35us grid steps) that fits block_b,
    # rounded to a 16-row granule (bf16-friendly sublane packing).
    tb = min(block_b, _round_up(max(B, 1), ROW_GRANULE))
    if min_tiles > 1:
        tb = min(tb, _round_up(-(-B // min_tiles), ROW_GRANULE))
    tb = max(tb, ROW_GRANULE)
    b_pad = _round_up(B, tb)

    xp = x if b_pad == B else jnp.pad(x, ((0, b_pad - B), (0, 0)))

    grid = (b_pad // tb,)
    tile_map = lambda i: (i, 0)      # batch-tiled arrays
    const_map = lambda i: (0, 0)     # VMEM-resident weights / fused bias

    kernel = functools.partial(actor_kernel, std_off=std_off)

    out = pl.pallas_call(
        kernel,
        out_shape=jax.ShapeDtypeStruct((b_pad, head_w), jnp.bfloat16),
        grid=grid,
        in_specs=[
            pl.BlockSpec((tb, d_in), tile_map),
            pl.BlockSpec(packed["w1"].shape, const_map),
            pl.BlockSpec(packed["w2"].shape, const_map),
            pl.BlockSpec(packed["w3"].shape, const_map),
            pl.BlockSpec(packed["wh"].shape, const_map),
            pl.BlockSpec(packed["bias"].shape, const_map),
        ],
        out_specs=pl.BlockSpec((tb, head_w), tile_map),
        compiler_params=pltpu.CompilerParams(
            dimension_semantics=("parallel",)),
    )(xp, packed["w1"], packed["w2"], packed["w3"], packed["wh"],
      packed["bias"])

    mu = out[:B, :out_dim].astype(jnp.float32)
    std = out[:B, std_off:std_off + out_dim].astype(jnp.float32)
    return mu, std


def init_params(key, input_dim, output_dim, hidden=HIDDEN, latent=LATENT):
    """Deterministic init mimicking nn.Linear default: U(-1/sqrt(fan_in), +)."""
    def linear(key, fan_in, fan_out):
        kw, kb = jax.random.split(key)
        bound = 1.0 / jnp.sqrt(fan_in)
        w = jax.random.uniform(kw, (fan_in, fan_out), jnp.float32, -bound, bound)
        b = jax.random.uniform(kb, (1, fan_out), jnp.float32, -bound, bound)
        return w, b

    keys = jax.random.split(key, 5)
    w1, b1 = linear(keys[0], input_dim, hidden)
    w2, b2 = linear(keys[1], hidden, hidden)
    w3, b3 = linear(keys[2], hidden, latent)
    wmu, bmu = linear(keys[3], latent, output_dim)
    wstd, bstd = linear(keys[4], latent, output_dim)
    return dict(w1=w1, b1=b1, w2=w2, b2=b2, w3=w3, b3=b3,
                wmu=wmu, bmu=bmu, wstd=wstd, bstd=bstd)


def actor_reference(x, p):
    """Pure-JAX f32 reference for correctness checking."""
    h = jax.nn.relu(x @ p["w1"] + p["b1"])
    h = jax.nn.relu(h @ p["w2"] + p["b2"])
    latent = jax.nn.relu(h @ p["w3"] + p["b3"])
    mu = latent @ p["wmu"] + p["bmu"]
    std = jax.nn.softplus(latent @ p["wstd"] + p["bstd"])
    return mu, std


if __name__ == "__main__":
    key = jax.random.PRNGKey(0)
    k_param, k_x = jax.random.split(key)

    # Small shapes consistent with the module; B=200 exercises the batch
    # padding path and (with min_tiles=2) the multi-tile parallel grid.
    B, INPUT_DIM, OUTPUT_DIM = 200, 16, 8
    params = init_params(k_param, INPUT_DIM, OUTPUT_DIM)
    packed = pack_params(params)
    x = jax.random.normal(k_x, (B, INPUT_DIM), jnp.float32)

    mu_ref, std_ref = actor_reference(x, params)

    # Single-tile path (v5e/v6e style) and 2-tile path (v7x style).
    for min_tiles in (1, 2):
        mu, std = actor_forward(x, packed, out_dim=OUTPUT_DIM,
                                min_tiles=min_tiles)
        jax.block_until_ready((mu, std))

        assert mu.shape == (B, OUTPUT_DIM) and std.shape == (B, OUTPUT_DIM)
        # bf16 matmul operands + bf16 output (f32 accumulate) -> loose tol.
        assert jnp.allclose(mu, mu_ref, atol=5e-2, rtol=5e-2), \
            float(jnp.max(jnp.abs(mu - mu_ref)))
        assert jnp.allclose(std, std_ref, atol=5e-2, rtol=5e-2), \
            float(jnp.max(jnp.abs(std - std_ref)))
        assert bool(jnp.all(std > 0.0))

    print("KERNEL_OK")
</pallas_src>

<mosaic_0001>
module attributes {stable_mosaic.version = 11 : i64} {
  func.func @actor_kernel(%arg0: i32, %arg1: memref<208x16xf32, #tpu.memory_space<vmem>>, %arg2: memref<16x128xbf16, #tpu.memory_space<vmem>>, %arg3: memref<128x128xbf16, #tpu.memory_space<vmem>>, %arg4: memref<128x128xbf16, #tpu.memory_space<vmem>>, %arg5: memref<128x128xbf16, #tpu.memory_space<vmem>>, %arg6: memref<1x512xf32, #tpu.memory_space<vmem>>, %arg7: memref<208x128xbf16, #tpu.memory_space<vmem>>) attributes {dimension_semantics = [#tpu.dimension_semantics<parallel>], iteration_bounds = array<i64: 1>, scalar_prefetch = 0 : i64, scratch_operands = 0 : i64, tpu.core_type = #tpu.core_type<tc>, window_params = [{transform_indices = @transform_0, window_bounds = array<i64: 208, 16>}, {pipeline_mode = #tpu.pipeline_mode<synchronous>, transform_indices = @transform_1, window_bounds = array<i64: 16, 128>}, {pipeline_mode = #tpu.pipeline_mode<synchronous>, transform_indices = @transform_2, window_bounds = array<i64: 128, 128>}, {pipeline_mode = #tpu.pipeline_mode<synchronous>, transform_indices = @transform_3, window_bounds = array<i64: 128, 128>}, {pipeline_mode = #tpu.pipeline_mode<synchronous>, transform_indices = @transform_4, window_bounds = array<i64: 128, 128>}, {pipeline_mode = #tpu.pipeline_mode<synchronous>, transform_indices = @transform_5, window_bounds = array<i64: 1, 512>}, {transform_indices = @transform_6, window_bounds = array<i64: 208, 128>}]} {
    %c0 = arith.constant 0 : index
    %c0_0 = arith.constant 0 : index
    %0 = vector.load %arg6[%c0, %c0_0] : memref<1x512xf32, #tpu.memory_space<vmem>>, vector<1x128xf32>
    %c0_1 = arith.constant 0 : index
    %c128 = arith.constant 128 : index
    %1 = vector.load %arg6[%c0_1, %c128] : memref<1x512xf32, #tpu.memory_space<vmem>>, vector<1x128xf32>
    %c0_2 = arith.constant 0 : index
    %c256 = arith.constant 256 : index
    %2 = vector.load %arg6[%c0_2, %c256] : memref<1x512xf32, #tpu.memory_space<vmem>>, vector<1x128xf32>
    %c0_3 = arith.constant 0 : index
    %c384 = arith.constant 384 : index
    %3 = vector.load %arg6[%c0_3, %c384] : memref<1x512xf32, #tpu.memory_space<vmem>>, vector<1x128xf32>
    %c0_4 = arith.constant 0 : index
    %c0_5 = arith.constant 0 : index
    %4 = vector.load %arg1[%c0_4, %c0_5] : memref<208x16xf32, #tpu.memory_space<vmem>>, vector<208x16xf32>
    %5 = arith.truncf %4 : vector<208x16xf32> to vector<208x16xbf16>
    %c0_6 = arith.constant 0 : index
    %c0_7 = arith.constant 0 : index
    %6 = vector.load %arg2[%c0_6, %c0_7] : memref<16x128xbf16, #tpu.memory_space<vmem>>, vector<16x128xbf16>
    %cst = arith.constant dense<0.000000e+00> : vector<208x128xf32>
    %7 = tpu.matmul %5, %6, %cst {dimension_numbers = #tpu.dot_dimension_numbers<[1], [0], [0], [1], [0, 0, 1, 1], [], []>} : vector<208x16xbf16>, vector<16x128xbf16>, vector<208x128xf32> -> vector<208x128xf32>
    %8 = vector.broadcast %0 : vector<1x128xf32> to vector<208x128xf32>
    %9 = arith.addf %7, %8 : vector<208x128xf32>
    %cst_8 = arith.constant 0.000000e+00 : f32
    %10 = vector.broadcast %cst_8 : f32 to vector<208x128xf32>
    %11 = arith.maximumf %9, %10 : vector<208x128xf32>
    %12 = arith.truncf %11 : vector<208x128xf32> to vector<208x128xbf16>
    %c0_9 = arith.constant 0 : index
    %c0_10 = arith.constant 0 : index
    %13 = vector.load %arg3[%c0_9, %c0_10] : memref<128x128xbf16, #tpu.memory_space<vmem>>, vector<128x128xbf16>
    %cst_11 = arith.constant dense<0.000000e+00> : vector<208x128xf32>
    %14 = tpu.matmul %12, %13, %cst_11 {dimension_numbers = #tpu.dot_dimension_numbers<[1], [0], [0], [1], [0, 0, 1, 1], [], []>} : vector<208x128xbf16>, vector<128x128xbf16>, vector<208x128xf32> -> vector<208x128xf32>
    %15 = vector.broadcast %1 : vector<1x128xf32> to vector<208x128xf32>
    %16 = arith.addf %14, %15 : vector<208x128xf32>
    %cst_12 = arith.constant 0.000000e+00 : f32
    %17 = vector.broadcast %cst_12 : f32 to vector<208x128xf32>
    %18 = arith.maximumf %16, %17 : vector<208x128xf32>
    %19 = arith.truncf %18 : vector<208x128xf32> to vector<208x128xbf16>
    %c0_13 = arith.constant 0 : index
    %c0_14 = arith.constant 0 : index
    %20 = vector.load %arg4[%c0_13, %c0_14] : memref<128x128xbf16, #tpu.memory_space<vmem>>, vector<128x128xbf16>
    %cst_15 = arith.constant dense<0.000000e+00> : vector<208x128xf32>
    %21 = tpu.matmul %19, %20, %cst_15 {dimension_numbers = #tpu.dot_dimension_numbers<[1], [0], [0], [1], [0, 0, 1, 1], [], []>} : vector<208x128xbf16>, vector<128x128xbf16>, vector<208x128xf32> -> vector<208x128xf32>
    %22 = vector.broadcast %2 : vector<1x128xf32> to vector<208x128xf32>
    %23 = arith.addf %21, %22 : vector<208x128xf32>
    %cst_16 = arith.constant 0.000000e+00 : f32
    %24 = vector.broadcast %cst_16 : f32 to vector<208x128xf32>
    %25 = arith.maximumf %23, %24 : vector<208x128xf32>
    %26 = arith.truncf %25 : vector<208x128xf32> to vector<208x128xbf16>
    %c0_17 = arith.constant 0 : index
    %c0_18 = arith.constant 0 : index
    %27 = vector.load %arg5[%c0_17, %c0_18] : memref<128x128xbf16, #tpu.memory_space<vmem>>, vector<128x128xbf16>
    %cst_19 = arith.constant dense<0.000000e+00> : vector<208x128xf32>
    %28 = tpu.matmul %26, %27, %cst_19 {dimension_numbers = #tpu.dot_dimension_numbers<[1], [0], [0], [1], [0, 0, 1, 1], [], []>} : vector<208x128xbf16>, vector<128x128xbf16>, vector<208x128xf32> -> vector<208x128xf32>
    %29 = vector.broadcast %3 : vector<1x128xf32> to vector<208x128xf32>
    %30 = arith.addf %28, %29 : vector<208x128xf32>
    %31 = tpu.iota {dimensions = array<i32: 1>} : vector<208x128xi32>
    %c64_i32 = arith.constant 64 : i32
    %32 = vector.broadcast %c64_i32 : i32 to vector<208x128xi32>
    %33 = arith.cmpi slt, %31, %32 : vector<208x128xi32>
    %cst_20 = arith.constant 2.000000e+01 : f32
    %34 = vector.broadcast %cst_20 : f32 to vector<208x128xf32>
    %35 = arith.cmpf ogt, %30, %34 : vector<208x128xf32>
    %cst_21 = arith.constant 2.000000e+01 : f32
    %36 = vector.broadcast %cst_21 : f32 to vector<208x128xf32>
    %37 = arith.minimumf %30, %36 : vector<208x128xf32>
    %38 = math.exp %37 : vector<208x128xf32>
    %39 = math.log1p %38 : vector<208x128xf32>
    %40 = arith.select %35, %30, %39 : vector<208x128xi1>, vector<208x128xf32>
    %41 = arith.select %33, %30, %40 : vector<208x128xi1>, vector<208x128xf32>
    %42 = arith.truncf %41 : vector<208x128xf32> to vector<208x128xbf16>
    %c0_22 = arith.constant 0 : index
    %c0_23 = arith.constant 0 : index
    %43 = vector.load %arg7[%c0_22, %c0_23] : memref<208x128xbf16, #tpu.memory_space<vmem>>, vector<208x128xbf16>
    tpu.vector_store %arg7[%c0_22, %c0_23], %42 {strides = array<i32>} : memref<208x128xbf16, #tpu.memory_space<vmem>>, vector<208x128xbf16>,
    return
  }
  func.func @transform_0(%arg0: i32) -> (i32, i32) {
    %c0_i32 = arith.constant 0 : i32
    %c0_i32_0 = arith.constant 0 : i32
    return %arg0, %c0_i32 : i32, i32
  }
  func.func @transform_1(%arg0: i32) -> (i32, i32) {
    %c0_i32 = arith.constant 0 : i32
    %c0_i32_0 = arith.constant 0 : i32
    %c0_i32_1 = arith.constant 0 : i32
    return %c0_i32, %c0_i32_0 : i32, i32
  }
  func.func @transform_2(%arg0: i32) -> (i32, i32) {
    %c0_i32 = arith.constant 0 : i32
    %c0_i32_0 = arith.constant 0 : i32
    %c0_i32_1 = arith.constant 0 : i32
    return %c0_i32, %c0_i32_0 : i32, i32
  }
  func.func @transform_3(%arg0: i32) -> (i32, i32) {
    %c0_i32 = arith.constant 0 : i32
    %c0_i32_0 = arith.constant 0 : i32
    %c0_i32_1 = arith.constant 0 : i32
    return %c0_i32, %c0_i32_0 : i32, i32
  }
  func.func @transform_4(%arg0: i32) -> (i32, i32) {
    %c0_i32 = arith.constant 0 : i32
    %c0_i32_0 = arith.constant 0 : i32
    %c0_i32_1 = arith.constant 0 : i32
    return %c0_i32, %c0_i32_0 : i32, i32
  }
  func.func @transform_5(%arg0: i32) -> (i32, i32) {
    %c0_i32 = arith.constant 0 : i32
    %c0_i32_0 = arith.constant 0 : i32
    %c0_i32_1 = arith.constant 0 : i32
    return %c0_i32, %c0_i32_0 : i32, i32
  }
  func.func @transform_6(%arg0: i32) -> (i32, i32) {
    %c0_i32 = arith.constant 0 : i32
    %c0_i32_0 = arith.constant 0 : i32
    return %arg0, %c0_i32 : i32, i32
  }
}

</mosaic_0001>

<bundles_post_ra>
// kernel: actor_forward.1
= control target key start
LH: loop header
LB: loop body
LE: loop exit
PB: predicated region body
PF: predicated region fallthrough
CT: control target
= control target key end

     0   :  { %vm78_vm0 = vcmask 130048   ;;  %s2067_s1 = inlined_call_operand.vmem [shape: bf16[16,128], index: 1, kind: input, shape index: {}]   ;;  %s2068_s0 = inlined_call_operand.vmem [shape: f32[208,16], index: 0, kind: input, shape index: {}]   ;;  %s2069_s5 = inlined_call_operand.vmem [shape: f32[1,512], index: 5, kind: input, shape index: {}]   ;;  %s2070_s2 = inlined_call_operand.vmem [shape: bf16[128,128], index: 2, kind: input, shape index: {}]   ;;  %s2071_s3 = inlined_call_operand.vmem [shape: bf16[128,128], index: 3, kind: input, shape index: {}]   ;;  %s2072_s4 = inlined_call_operand.vmem [shape: bf16[128,128], index: 4, kind: input, shape index: {}]   ;;  %s2073_s6 = inlined_call_operand.vmem [shape: bf16[208,128], index: 6, kind: output, shape index: {}]  }
   0x1   :  { %v1294_v0 = vld [vmem:[%s2067_s1] sm:$0xff]  ;;  %v29_v2 = vld [vmem:[%s2068_s0 + $0x8] sm:$0xff]  ;;  %v30_v4 = vld [vmem:[%s2068_s0 + $0x10] sm:$0xff] }
   0x2   :  { %v28_v1 = vld [vmem:[%s2068_s0] sm:$0xff]  ;;  %125 = vmatpush.bf16.msra.mxu0 %v1294_v0  ;;  %v31_v5 = vld [vmem:[%s2068_s0 + $0x18] sm:$0xff]  ;;  %v33_v8 = vld [vmem:[%s2068_s0 + $0x28] sm:$0xff] }
   0x3   :  { %v54_v3 = vpack.c.bf16 %v29_v2, %v28_v1  ;;  %v55_v6 = vpack.c.bf16 %v31_v5, %v30_v4  ;;  %v32_v7 = vld [vmem:[%s2068_s0 + $0x20] sm:$0xff]  ;;  %v34_v10 = vld [vmem:[%s2068_s0 + $0x30] sm:$0xff]  ;;  %v35_v11 = vld [vmem:[%s2068_s0 + $0x38] sm:$0xff] }
   0x4   :  { %v56_v9 = vpack.c.bf16 %v33_v8, %v32_v7  ;;  %v57_v12 = vpack.c.bf16 %v35_v11, %v34_v10  ;;  %v36_v13 = vld [vmem:[%s2068_s0 + $0x40] sm:$0xff]  ;;  %v37_v14 = vld [vmem:[%s2068_s0 + $0x48] sm:$0xff]  ;;  %v1302_v16 = vld [vmem:[%s2070_s2 + $0x38] sm:$0xff] }
   0x5   :  { %1185 = vmatmul.msk.bf16.vlgmr.msra.gmra.mxu0 %vm78_vm0, %v54_v3  ;;  %v58_v15 = vpack.c.bf16 %v37_v14, %v36_v13  ;;  %298 = vmatpush.bf16.msra.mxu1 %v1302_v16  ;;  %v38_v17 = vld [vmem:[%s2068_s0 + $0x50] sm:$0xff]  ;;  %v39_v18 = vld [vmem:[%s2068_s0 + $0x58] sm:$0xff]  ;;  %v1300_v21 = vld [vmem:[%s2070_s2 + $0x28] sm:$0xff] }
   0x6   :  { %v59_v19 = vpack.c.bf16 %v39_v18, %v38_v17  ;;  %v1301_v20 = vld [vmem:[%s2070_s2 + $0x30] sm:$0xff]  ;;  %v1299_v22 = vld [vmem:[%s2070_s2 + $0x20] sm:$0xff]  ;;  %v41_v24 = vld [vmem:[%s2068_s0 + $0x68] sm:$0xff] }
   0x7   :  { %v40_v23 = vld [vmem:[%s2068_s0 + $0x60] sm:$0xff]  ;;  %v1298_v25 = vld [vmem:[%s2070_s2 + $0x18] sm:$0xff]  ;;  %v1297_v27 = vld [vmem:[%s2070_s2 + $0x10] sm:$0xff] }
   0x8   :  { %v60_v26 = vpack.c.bf16 %v41_v24, %v40_v23  ;;  %v1296_v28 = vld [vmem:[%s2070_s2 + $0x8] sm:$0xff]  ;;  %v1295_v29 = vld [vmem:[%s2070_s2] sm:$0xff]  ;;  %v42_v30 = vld [vmem:[%s2068_s0 + $0x70] sm:$0xff] }
   0x9   :  { %299 = vmatpush.bf16.msra.mxu1 %v1301_v20  ;;  %v43_v31 = vld [vmem:[%s2068_s0 + $0x78] sm:$0xff]  ;;  %v44_v33 = vld [vmem:[%s2068_s0 + $0x80] sm:$0xff]  ;;  %v45_v34 = vld [vmem:[%s2068_s0 + $0x88] sm:$0xff] }
   0xa   :  { %v61_v32 = vpack.c.bf16 %v43_v31, %v42_v30  ;;  %v62_v35 = vpack.c.bf16 %v45_v34, %v44_v33  ;;  %v1631_v37 = vld [vmem:[%s2069_s5] ss:$0 sm:$0xff]  ;;  %v46_v43 = vld [vmem:[%s2068_s0 + $0x90] sm:$0xff]  ;;  %v47_v44 = vld [vmem:[%s2068_s0 + $0x98] sm:$0xff] }
   0xb   :  { %v63_v46 = vpack.c.bf16 %v47_v44, %v46_v43  ;;  %v48_v53 = vld [vmem:[%s2068_s0 + $0xa0] sm:$0xff]  ;;  %v49_v54 = vld [vmem:[%s2068_s0 + $0xa8] sm:$0xff]  ;;  %v50_v63 = vld [vmem:[%s2068_s0 + $0xb0] sm:$0xff] }
   0xc   :  { %v64_v56 = vpack.c.bf16 %v49_v54, %v48_v53  ;;  %v51_v0 = vld [vmem:[%s2068_s0 + $0xb8] sm:$0xff]  ;;  %v53_v10 = vld [vmem:[%s2068_s0 + $0xc8] sm:$0xff]  ;;  %v1307_v31 = vld [vmem:[%s2071_s3 + $0x20] sm:$0xff] }
   0xd   :  { %300 = vmatpush.bf16.msra.mxu1 %v1300_v21  ;;  %v65_v2 = vpack.c.bf16 %v51_v0, %v50_v63  ;;  %v1310_v24 = vld [vmem:[%s2071_s3 + $0x38] sm:$0xff]  ;;  %v1308_v30 = vld [vmem:[%s2071_s3 + $0x28] sm:$0xff]  ;;  %v1303_v43 = vld [vmem:[%s2071_s3] sm:$0xff] }
   0xe   :  { %478 = vmatpush.bf16.msra.mxu2 %v1310_v24 }
  0x11   :  { %301 = vmatpush.bf16.msra.mxu1 %v1299_v22 }
  0x15   :  { %1186 = vmatmul.msk.bf16.gmra.mxu0 %vm78_vm0, %v55_v6  ;;  %302 = vmatpush.bf16.msra.mxu1 %v1298_v25 }
  0x19   :  { %303 = vmatpush.bf16.msra.mxu1 %v1297_v27 }
  0x1d   :  { %304 = vmatpush.bf16.msra.mxu1 %v1296_v28  ;;  %v1309_v28 = vld [vmem:[%s2071_s3 + $0x30] sm:$0xff] }
  0x1e   :  { %479 = vmatpush.bf16.msra.mxu2 %v1309_v28 }
  0x21   :  { %305 = vmatpush.bf16.msra.mxu1 %v1295_v29 }
  0x22   :  { %480 = vmatpush.bf16.msra.mxu2 %v1308_v30 }
  0x25   :  { %1187 = vmatmul.msk.bf16.gmra.mxu0 %vm78_vm0, %v56_v9  ;;  %v52_v9 = vld [vmem:[%s2068_s0 + $0xc0] sm:$0xff] }
  0x26   :  { %481 = vmatpush.bf16.msra.mxu2 %v1307_v31 }
  0x35   :  { %1188 = vmatmul.msk.bf16.gmra.mxu0 %vm78_vm0, %v57_v12  ;;  %v66_v12 = vpack.c.bf16 %v53_v10, %v52_v9 }
  0x45   :  { %1189 = vmatmul.msk.bf16.gmra.mxu0 %vm78_vm0, %v58_v15 }
  0x55   :  { %1190 = vmatmul.msk.bf16.gmra.mxu0 %vm78_vm0, %v59_v19 }
  0x65   :  { %1191 = vmatmul.msk.bf16.gmra.mxu0 %vm78_vm0, %v60_v26 }
  0x75   :  { %1192 = vmatmul.msk.bf16.gmra.mxu0 %vm78_vm0, %v61_v32 }
  0x82   :  { %v127_v36 = vpop.f32.mrf.mxu0 }
  0x83   :  { %v128_v38 = vadd.f32 %v1631_v37, %v127_v36 }
  0x85   :  { %1193 = vmatmul.msk.bf16.gmra.mxu0 %vm78_vm0, %v62_v35  ;;  %v192_v41 = vmax.f32 %v128_v38, 0.0  ;;  %v1306_v35 = vld [vmem:[%s2071_s3 + $0x18] sm:$0xff] }
  0x86   :  { %482 = vmatpush.bf16.msra.mxu2 %v1306_v35 }
  0x8a   :  { %v129_v39 = vpop.f32.mrf.mxu0 }
  0x8b   :  { %v130_v40 = vadd.f32 %v1631_v37, %v129_v39 }
  0x8d   :  { %v193_v42 = vmax.f32 %v130_v40, 0.0  ;;  %v1305_v40 = vld [vmem:[%s2071_s3 + $0x10] sm:$0xff] }
  0x8e   :  { %483 = vmatpush.bf16.msra.mxu2 %v1305_v40 }
  0x8f   :  { %v218_v45 = vpack.c.bf16 %v193_v42, %v192_v41  ;;  %v1304_v42 = vld [vmem:[%s2071_s3 + $0x8] sm:$0xff] }
  0x91   :  { %306 = vmatmul.bf16.vlgmr.msra.gmra.mxu1 %v218_v45 }
  0x92   :  { %v132_v47 = vpop.f32.mrf.mxu0  ;;  %484 = vmatpush.bf16.msra.mxu2 %v1304_v42 }
  0x93   :  { %v133_v48 = vadd.f32 %v1631_v37, %v132_v47 }
  0x95   :  { %1194 = vmatmul.msk.bf16.gmra.mxu0 %vm78_vm0, %v63_v46  ;;  %v194_v51 = vmax.f32 %v133_v48, 0.0 }
  0x96   :  { %485 = vmatpush.bf16.msra.mxu2 %v1303_v43 }
  0x9a   :  { %v134_v49 = vpop.f32.mrf.mxu0 }
  0x9b   :  { %v135_v50 = vadd.f32 %v1631_v37, %v134_v49 }
  0x9d   :  { %v195_v52 = vmax.f32 %v135_v50, 0.0 }
  0x9f   :  { %v219_v55 = vpack.c.bf16 %v195_v52, %v194_v51 }
  0xa1   :  { %311 = vmatmul.bf16.gmra.mxu1 %v219_v55 }
  0xa2   :  { %v137_v57 = vpop.f32.mrf.mxu0 }
  0xa3   :  { %v138_v58 = vadd.f32 %v1631_v37, %v137_v57 }
  0xa5   :  { %1195 = vmatmul.msk.bf16.gmra.mxu0 %vm78_vm0, %v64_v56  ;;  %v196_v61 = vmax.f32 %v138_v58, 0.0  ;;  %v1707_v58 = vld [vmem:[%s2069_s5 + $0x1] ss:$0 sm:$0xff] }
  0xaa   :  { %v139_v59 = vpop.f32.mrf.mxu0 }
  0xab   :  { %v140_v60 = vadd.f32 %v1631_v37, %v139_v59 }
  0xad   :  { %v197_v62 = vmax.f32 %v140_v60, 0.0 }
  0xaf   :  { %v220_v1 = vpack.c.bf16 %v197_v62, %v196_v61 }
  0xb1   :  { %316 = vmatmul.bf16.gmra.mxu1 %v220_v1 }
  0xb2   :  { %v142_v3 = vpop.f32.mrf.mxu0 }
  0xb3   :  { %v143_v4 = vadd.f32 %v1631_v37, %v142_v3 }
  0xb5   :  { %1196 = vmatmul.msk.bf16.gmra.mxu0 %vm78_vm0, %v65_v2  ;;  %v198_v7 = vmax.f32 %v143_v4, 0.0 }
  0xba   :  { %v144_v5 = vpop.f32.mrf.mxu0 }
  0xbb   :  { %v145_v6 = vadd.f32 %v1631_v37, %v144_v5 }
  0xbd   :  { %v199_v8 = vmax.f32 %v145_v6, 0.0 }
  0xbf   :  { %v221_v11 = vpack.c.bf16 %v199_v8, %v198_v7 }
  0xc1   :  { %321 = vmatmul.bf16.gmra.mxu1 %v221_v11 }
  0xc2   :  { %v147_v13 = vpop.f32.mrf.mxu0 }
  0xc3   :  { %v148_v14 = vadd.f32 %v1631_v37, %v147_v13 }
  0xc5   :  { %1197 = vmatmul.msk.bf16.gmra.mxu0 %vm78_vm0, %v66_v12  ;;  %v200_v17 = vmax.f32 %v148_v14, 0.0 }
  0xca   :  { %v149_v15 = vpop.f32.mrf.mxu0 }
  0xcb   :  { %v150_v16 = vadd.f32 %v1631_v37, %v149_v15 }
  0xcd   :  { %v201_v18 = vmax.f32 %v150_v16, 0.0 }
  0xcf   :  { %v222_v19 = vpack.c.bf16 %v201_v18, %v200_v17 }
  0xd1   :  { %326 = vmatmul.bf16.gmra.mxu1 %v222_v19 }
  0xd2   :  { %v152_v20 = vpop.f32.mrf.mxu0 }
  0xd3   :  { %v153_v21 = vadd.f32 %v1631_v37, %v152_v20 }
  0xd5   :  { %v202_v25 = vmax.f32 %v153_v21, 0.0 }
  0xda   :  { %v154_v22 = vpop.f32.mrf.mxu0 }
  0xdb   :  { %v155_v23 = vadd.f32 %v1631_v37, %v154_v22 }
  0xdd   :  { %v203_v26 = vmax.f32 %v155_v23, 0.0 }
  0xdf   :  { %v223_v27 = vpack.c.bf16 %v203_v26, %v202_v25 }
  0xe1   :  { %331 = vmatmul.bf16.gmra.mxu1 %v223_v27 }
  0xe2   :  { %v157_v29 = vpop.f32.mrf.mxu0 }
  0xe3   :  { %v158_v32 = vadd.f32 %v1631_v37, %v157_v29 }
  0xe5   :  { %v204_v36 = vmax.f32 %v158_v32, 0.0 }
  0xea   :  { %v159_v33 = vpop.f32.mrf.mxu0 }
  0xeb   :  { %v160_v34 = vadd.f32 %v1631_v37, %v159_v33 }
  0xed   :  { %v205_v38 = vmax.f32 %v160_v34, 0.0 }
  0xef   :  { %v224_v39 = vpack.c.bf16 %v205_v38, %v204_v36 }
  0xf1   :  { %336 = vmatmul.bf16.gmra.mxu1 %v224_v39 }
  0xf2   :  { %v162_v41 = vpop.f32.mrf.mxu0 }
  0xf3   :  { %v163_v44 = vadd.f32 %v1631_v37, %v162_v41 }
  0xf5   :  { %v206_v47 = vmax.f32 %v163_v44, 0.0 }
  0xfa   :  { %v164_v45 = vpop.f32.mrf.mxu0 }
  0xfb   :  { %v165_v46 = vadd.f32 %v1631_v37, %v164_v45 }
  0xfd   :  { %v207_v48 = vmax.f32 %v165_v46, 0.0 }
  0xff   :  { %v225_v49 = vpack.c.bf16 %v207_v48, %v206_v47 }
 0x101   :  { %341 = vmatmul.bf16.gmra.mxu1 %v225_v49 }
 0x102   :  { %v167_v50 = vpop.f32.mrf.mxu0 }
 0x103   :  { %v168_v51 = vadd.f32 %v1631_v37, %v167_v50 }
 0x105   :  { %v208_v54 = vmax.f32 %v168_v51, 0.0 }
 0x10a   :  { %v169_v52 = vpop.f32.mrf.mxu0 }
 0x10b   :  { %v170_v53 = vadd.f32 %v1631_v37, %v169_v52 }
 0x10d   :  { %v209_v55 = vmax.f32 %v170_v53, 0.0 }
 0x10e   :  { %v307_v56 = vpop.f32.mrf.mxu1 }
 0x10f   :  { %v226_v57 = vpack.c.bf16 %v209_v55, %v208_v54  ;;  %v308_v60 = vadd.f32 %v1707_v58, %v307_v56 }
 0x111   :  { %346 = vmatmul.bf16.gmra.mxu1 %v226_v57  ;;  %v372_v63 = vmax.f32 %v308_v60, 0.0 }
 0x112   :  { %v172_v59 = vpop.f32.mrf.mxu0 }
 0x113   :  { %v173_v0 = vadd.f32 %v1631_v37, %v172_v59 }
 0x115   :  { %v210_v5 = vmax.f32 %v173_v0, 0.0 }
 0x116   :  { %v309_v61 = vpop.f32.mrf.mxu1 }
 0x117   :  { %v310_v62 = vadd.f32 %v1707_v58, %v309_v61 }
 0x119   :  { %v373_v1 = vmax.f32 %v310_v62, 0.0 }
 0x11a   :  { %v174_v2 = vpop.f32.mrf.mxu0 }
 0x11b   :  { %v175_v3 = vadd.f32 %v1631_v37, %v174_v2  ;;  %v398_v4 = vpack.c.bf16 %v373_v1, %v372_v63  ;;  %v1318_v2 = vld [vmem:[%s2072_s4 + $0x38] sm:$0xff] }
 0x11c   :  { %658 = vmatpush.bf16.msra.mxu3 %v1318_v2 }
 0x11d   :  { %v211_v6 = vmax.f32 %v175_v3, 0.0  ;;  %486 = vmatmul.bf16.vlgmr.msra.gmra.mxu2 %v398_v4  ;;  %v1317_v3 = vld [vmem:[%s2072_s4 + $0x30] sm:$0xff] }
 0x11e   :  { %v312_v7 = vpop.f32.mrf.mxu1 }
 0x11f   :  { %v227_v8 = vpack.c.bf16 %v211_v6, %v210_v5  ;;  %v313_v10 = vadd.f32 %v1707_v58, %v312_v7  ;;  %v1316_v6 = vld [vmem:[%s2072_s4 + $0x28] sm:$0xff] }
 0x120   :  { %659 = vmatpush.bf16.msra.mxu3 %v1317_v3 }
 0x121   :  { %351 = vmatmul.bf16.gmra.mxu1 %v227_v8  ;;  %v374_v13 = vmax.f32 %v313_v10, 0.0  ;;  %v1315_v10 = vld [vmem:[%s2072_s4 + $0x20] sm:$0xff] }
 0x122   :  { %v177_v9 = vpop.f32.mrf.mxu0 }
 0x123   :  { %v178_v14 = vadd.f32 %v1631_v37, %v177_v9 }
 0x124   :  { %660 = vmatpush.bf16.msra.mxu3 %v1316_v6 }
 0x125   :  { %v212_v19 = vmax.f32 %v178_v14, 0.0  ;;  %v1313_v14 = vld [vmem:[%s2072_s4 + $0x10] sm:$0xff] }
 0x126   :  { %v314_v11 = vpop.f32.mrf.mxu1 }
 0x127   :  { %v315_v12 = vadd.f32 %v1707_v58, %v314_v11 }
 0x128   :  { %661 = vmatpush.bf16.msra.mxu3 %v1315_v10 }
 0x129   :  { %v375_v15 = vmax.f32 %v315_v12, 0.0 }
 0x12a   :  { %v179_v16 = vpop.f32.mrf.mxu0 }
 0x12b   :  { %v180_v17 = vadd.f32 %v1631_v37, %v179_v16  ;;  %v399_v18 = vpack.c.bf16 %v375_v15, %v374_v13  ;;  %v1314_v13 = vld [vmem:[%s2072_s4 + $0x18] sm:$0xff] }
 0x12c   :  { %662 = vmatpush.bf16.msra.mxu3 %v1314_v13 }
 0x12d   :  { %v213_v20 = vmax.f32 %v180_v17, 0.0  ;;  %491 = vmatmul.bf16.gmra.mxu2 %v399_v18  ;;  %v1312_v17 = vld [vmem:[%s2072_s4 + $0x8] sm:$0xff] }
 0x12e   :  { %v317_v21 = vpop.f32.mrf.mxu1 }
 0x12f   :  { %v228_v22 = vpack.c.bf16 %v213_v20, %v212_v19  ;;  %v318_v24 = vadd.f32 %v1707_v58, %v317_v21  ;;  %v1311_v21 = vld [vmem:[%s2072_s4] sm:$0xff] }
 0x130   :  { %663 = vmatpush.bf16.msra.mxu3 %v1313_v14 }
 0x131   :  { %356 = vmatmul.bf16.gmra.mxu1 %v228_v22  ;;  %v376_v27 = vmax.f32 %v318_v24, 0.0 }
 0x132   :  { %v182_v23 = vpop.f32.mrf.mxu0 }
 0x133   :  { %v183_v28 = vadd.f32 %v1631_v37, %v182_v23 }
 0x134   :  { %664 = vmatpush.bf16.msra.mxu3 %v1312_v17 }
 0x135   :  { %v214_v33 = vmax.f32 %v183_v28, 0.0 }
 0x136   :  { %v319_v25 = vpop.f32.mrf.mxu1 }
 0x137   :  { %v320_v26 = vadd.f32 %v1707_v58, %v319_v25 }
 0x138   :  { %665 = vmatpush.bf16.msra.mxu3 %v1311_v21 }
 0x139   :  { %v377_v29 = vmax.f32 %v320_v26, 0.0 }
 0x13a   :  { %v184_v30 = vpop.f32.mrf.mxu0 }
 0x13b   :  { %v185_v31 = vadd.f32 %v1631_v37, %v184_v30  ;;  %v400_v32 = vpack.c.bf16 %v377_v29, %v376_v27 }
 0x13d   :  { %v215_v34 = vmax.f32 %v185_v31, 0.0  ;;  %496 = vmatmul.bf16.gmra.mxu2 %v400_v32  ;;  %v1762_v32 = vld [vmem:[%s2069_s5 + $0x2] ss:$0 sm:$0xff] }
 0x13e   :  { %v322_v35 = vpop.f32.mrf.mxu1 }
 0x13f   :  { %v229_v36 = vpack.c.bf16 %v215_v34, %v214_v33  ;;  %v323_v39 = vadd.f32 %v1707_v58, %v322_v35 }
 0x141   :  { %361 = vmatmul.bf16.gmra.mxu1 %v229_v36  ;;  %v378_v42 = vmax.f32 %v323_v39, 0.0 }
 0x142   :  { %v187_v38 = vpop.f32.mrf.mxu0 }
 0x143   :  { %v188_v43 = vadd.f32 %v1631_v37, %v187_v38 }
 0x145   :  { %v216_v48 = vmax.f32 %v188_v43, 0.0 }
 0x146   :  { %v324_v40 = vpop.f32.mrf.mxu1 }
 0x147   :  { %v325_v41 = vadd.f32 %v1707_v58, %v324_v40 }
 0x149   :  { %v379_v44 = vmax.f32 %v325_v41, 0.0 }
 0x14a   :  { %v189_v45 = vpop.f32.mrf.mxu0 }
 0x14b   :  { %v190_v46 = vadd.f32 %v1631_v37, %v189_v45  ;;  %v401_v47 = vpack.c.bf16 %v379_v44, %v378_v42 }
 0x14d   :  { %v217_v49 = vmax.f32 %v190_v46, 0.0  ;;  %501 = vmatmul.bf16.gmra.mxu2 %v401_v47 }
 0x14e   :  { %v327_v50 = vpop.f32.mrf.mxu1 }
 0x14f   :  { %v230_v51 = vpack.c.bf16 %v217_v49, %v216_v48  ;;  %v328_v52 = vadd.f32 %v1707_v58, %v327_v50 }
 0x151   :  { %366 = vmatmul.bf16.gmra.mxu1 %v230_v51  ;;  %v380_v55 = vmax.f32 %v328_v52, 0.0 }
 0x156   :  { %v329_v53 = vpop.f32.mrf.mxu1 }
 0x157   :  { %v330_v54 = vadd.f32 %v1707_v58, %v329_v53 }
 0x159   :  { %v381_v56 = vmax.f32 %v330_v54, 0.0 }
 0x15b   :  { %v402_v57 = vpack.c.bf16 %v381_v56, %v380_v55 }
 0x15d   :  { %506 = vmatmul.bf16.gmra.mxu2 %v402_v57 }
 0x15e   :  { %v332_v59 = vpop.f32.mrf.mxu1 }
 0x15f   :  { %v333_v60 = vadd.f32 %v1707_v58, %v332_v59 }
 0x161   :  { %v382_v62 = vmax.f32 %v333_v60, 0.0 }
 0x166   :  { %v334_v37 = vpop.f32.mrf.mxu1 }
 0x167   :  { %v335_v61 = vadd.f32 %v1707_v58, %v334_v37 }
 0x169   :  { %v383_v63 = vmax.f32 %v335_v61, 0.0 }
 0x16b   :  { %v403_v0 = vpack.c.bf16 %v383_v63, %v382_v62 }
 0x16d   :  { %511 = vmatmul.bf16.gmra.mxu2 %v403_v0 }
 0x16e   :  { %v337_v1 = vpop.f32.mrf.mxu1 }
 0x16f   :  { %v338_v4 = vadd.f32 %v1707_v58, %v337_v1 }
 0x171   :  { %v384_v8 = vmax.f32 %v338_v4, 0.0 }
 0x176   :  { %v339_v5 = vpop.f32.mrf.mxu1 }
 0x177   :  { %v340_v7 = vadd.f32 %v1707_v58, %v339_v5 }
 0x179   :  { %v385_v9 = vmax.f32 %v340_v7, 0.0 }
 0x17b   :  { %v404_v11 = vpack.c.bf16 %v385_v9, %v384_v8 }
 0x17d   :  { %516 = vmatmul.bf16.gmra.mxu2 %v404_v11 }
 0x17e   :  { %v342_v12 = vpop.f32.mrf.mxu1 }
 0x17f   :  { %v343_v15 = vadd.f32 %v1707_v58, %v342_v12 }
 0x181   :  { %v386_v19 = vmax.f32 %v343_v15, 0.0 }
 0x186   :  { %v344_v16 = vpop.f32.mrf.mxu1 }
 0x187   :  { %v345_v18 = vadd.f32 %v1707_v58, %v344_v16 }
 0x189   :  { %v387_v20 = vmax.f32 %v345_v18, 0.0 }
 0x18b   :  { %v405_v22 = vpack.c.bf16 %v387_v20, %v386_v19 }
 0x18d   :  { %521 = vmatmul.bf16.gmra.mxu2 %v405_v22 }
 0x18e   :  { %v347_v23 = vpop.f32.mrf.mxu1 }
 0x18f   :  { %v348_v24 = vadd.f32 %v1707_v58, %v347_v23 }
 0x191   :  { %v388_v27 = vmax.f32 %v348_v24, 0.0 }
 0x196   :  { %v349_v25 = vpop.f32.mrf.mxu1 }
 0x197   :  { %v350_v26 = vadd.f32 %v1707_v58, %v349_v25 }
 0x199   :  { %v389_v28 = vmax.f32 %v350_v26, 0.0 }
 0x19b   :  { %v406_v29 = vpack.c.bf16 %v389_v28, %v388_v27 }
 0x19d   :  { %526 = vmatmul.bf16.gmra.mxu2 %v406_v29 }
 0x19e   :  { %v352_v30 = vpop.f32.mrf.mxu1 }
 0x19f   :  { %v353_v33 = vadd.f32 %v1707_v58, %v352_v30 }
 0x1a0   :  { %v487_v31 = vpop.f32.mrf.mxu2 }
 0x1a1   :  { %v488_v35 = vadd.f32 %v1762_v32, %v487_v31  ;;  %v390_v39 = vmax.f32 %v353_v33, 0.0 }
 0x1a3   :  { %v552_v42 = vmax.f32 %v488_v35, 0.0 }
 0x1a6   :  { %v354_v34 = vpop.f32.mrf.mxu1 }
 0x1a7   :  { %v355_v36 = vadd.f32 %v1707_v58, %v354_v34 }
 0x1a8   :  { %v489_v38 = vpop.f32.mrf.mxu2 }
 0x1a9   :  { %v391_v40 = vmax.f32 %v355_v36, 0.0  ;;  %v490_v41 = vadd.f32 %v1762_v32, %v489_v38 }
 0x1ab   :  { %v553_v43 = vmax.f32 %v490_v41, 0.0  ;;  %v407_v44 = vpack.c.bf16 %v391_v40, %v390_v39 }
 0x1ad   :  { %531 = vmatmul.bf16.gmra.mxu2 %v407_v44  ;;  %v578_v45 = vpack.c.bf16 %v553_v43, %v552_v42 }
 0x1ae   :  { %v357_v46 = vpop.f32.mrf.mxu1 }
 0x1af   :  { %666 = vmatmul.bf16.vlgmr.msra.gmra.mxu3 %v578_v45  ;;  %v358_v48 = vadd.f32 %v1707_v58, %v357_v46 }
 0x1b0   :  { %v492_v47 = vpop.f32.mrf.mxu2 }
 0x1b1   :  { %v493_v50 = vadd.f32 %v1762_v32, %v492_v47  ;;  %v392_v53 = vmax.f32 %v358_v48, 0.0 }
 0x1b3   :  { %v554_v56 = vmax.f32 %v493_v50, 0.0 }
 0x1b6   :  { %v359_v49 = vpop.f32.mrf.mxu1 }
 0x1b7   :  { %v360_v51 = vadd.f32 %v1707_v58, %v359_v49 }
 0x1b8   :  { %v494_v52 = vpop.f32.mrf.mxu2 }
 0x1b9   :  { %v393_v54 = vmax.f32 %v360_v51, 0.0  ;;  %v495_v55 = vadd.f32 %v1762_v32, %v494_v52 }
 0x1bb   :  { %v555_v57 = vmax.f32 %v495_v55, 0.0  ;;  %v408_v59 = vpack.c.bf16 %v393_v54, %v392_v53 }
 0x1bd   :  { %536 = vmatmul.bf16.gmra.mxu2 %v408_v59  ;;  %v579_v60 = vpack.c.bf16 %v555_v57, %v554_v56 }
 0x1be   :  { %v362_v37 = vpop.f32.mrf.mxu1 }
 0x1bf   :  { %671 = vmatmul.bf16.gmra.mxu3 %v579_v60  ;;  %v363_v62 = vadd.f32 %v1707_v58, %v362_v37  ;;  %v1793_v37 = vld [vmem:[%s2069_s5 + $0x3] ss:$0 sm:$0xff] }
 0x1c0   :  { %v497_v61 = vpop.f32.mrf.mxu2 }
 0x1c1   :  { %v498_v0 = vadd.f32 %v1762_v32, %v497_v61  ;;  %v394_v3 = vmax.f32 %v363_v62, 0.0 }
 0x1c3   :  { %v556_v6 = vmax.f32 %v498_v0, 0.0 }
 0x1c6   :  { %v364_v63 = vpop.f32.mrf.mxu1 }
 0x1c7   :  { %v365_v1 = vadd.f32 %v1707_v58, %v364_v63 }
 0x1c8   :  { %v499_v2 = vpop.f32.mrf.mxu2 }
 0x1c9   :  { %v395_v4 = vmax.f32 %v365_v1, 0.0  ;;  %v500_v5 = vadd.f32 %v1762_v32, %v499_v2 }
 0x1cb   :  { %v557_v7 = vmax.f32 %v500_v5, 0.0  ;;  %v409_v8 = vpack.c.bf16 %v395_v4, %v394_v3 }
 0x1cd   :  { %541 = vmatmul.bf16.gmra.mxu2 %v409_v8  ;;  %v580_v9 = vpack.c.bf16 %v557_v7, %v556_v6 }
 0x1ce   :  { %v367_v10 = vpop.f32.mrf.mxu1 }
 0x1cf   :  { %676 = vmatmul.bf16.gmra.mxu3 %v580_v9  ;;  %v368_v12 = vadd.f32 %v1707_v58, %v367_v10 }
 0x1d0   :  { %v502_v11 = vpop.f32.mrf.mxu2 }
 0x1d1   :  { %v503_v14 = vadd.f32 %v1762_v32, %v502_v11  ;;  %v396_v17 = vmax.f32 %v368_v12, 0.0 }
 0x1d3   :  { %v558_v20 = vmax.f32 %v503_v14, 0.0 }
 0x1d6   :  { %v369_v13 = vpop.f32.mrf.mxu1 }
 0x1d7   :  { %v370_v15 = vadd.f32 %v1707_v58, %v369_v13 }
 0x1d8   :  { %v504_v16 = vpop.f32.mrf.mxu2 }
 0x1d9   :  { %v397_v18 = vmax.f32 %v370_v15, 0.0  ;;  %v505_v19 = vadd.f32 %v1762_v32, %v504_v16 }
 0x1db   :  { %v410_v21 = vpack.c.bf16 %v397_v18, %v396_v17  ;;  %v559_v22 = vmax.f32 %v505_v19, 0.0 }
 0x1dd   :  { %546 = vmatmul.bf16.gmra.mxu2 %v410_v21  ;;  %v581_v23 = vpack.c.bf16 %v559_v22, %v558_v20 }
 0x1df   :  { %681 = vmatmul.bf16.gmra.mxu3 %v581_v23 }
 0x1e0   :  { %v507_v24 = vpop.f32.mrf.mxu2 }
 0x1e1   :  { %v508_v25 = vadd.f32 %v1762_v32, %v507_v24 }
 0x1e3   :  { %v560_v28 = vmax.f32 %v508_v25, 0.0 }
 0x1e8   :  { %v509_v26 = vpop.f32.mrf.mxu2 }
 0x1e9   :  { %v510_v27 = vadd.f32 %v1762_v32, %v509_v26 }
 0x1eb   :  { %v561_v29 = vmax.f32 %v510_v27, 0.0 }
 0x1ed   :  { %v582_v58 = vpack.c.bf16 %v561_v29, %v560_v28  ;;  %v732_v28 = vlaneseq }
 0x1ef   :  { %686 = vmatmul.bf16.gmra.mxu3 %v582_v58 }
 0x1f0   :  { %v512_v30 = vpop.f32.mrf.mxu2 }
 0x1f1   :  { %v513_v31 = vadd.f32 %v1762_v32, %v512_v30 }
 0x1f3   :  { %v562_v35 = vmax.f32 %v513_v31, 0.0 }
 0x1f8   :  { %v514_v33 = vpop.f32.mrf.mxu2 }
 0x1f9   :  { %v515_v34 = vadd.f32 %v1762_v32, %v514_v33 }
 0x1fb   :  { %v563_v36 = vmax.f32 %v515_v34, 0.0 }
 0x1fd   :  { %v583_v38 = vpack.c.bf16 %v563_v36, %v562_v35 }
 0x1ff   :  { %691 = vmatmul.bf16.gmra.mxu3 %v583_v38 }
 0x200   :  { %v517_v39 = vpop.f32.mrf.mxu2 }
 0x201   :  { %v518_v40 = vadd.f32 %v1762_v32, %v517_v39 }
 0x203   :  { %v564_v43 = vmax.f32 %v518_v40, 0.0  ;;  %v1812_v40 = vand.u32 127, %v732_v28 }
 0x205   :  { %vm734_vm3 = vcmp.lt.s32.totalorder %v1812_v40, 64 }
 0x208   :  { %v519_v41 = vpop.f32.mrf.mxu2 }
 0x209   :  { %v520_v42 = vadd.f32 %v1762_v32, %v519_v41 }
 0x20b   :  { %v565_v44 = vmax.f32 %v520_v42, 0.0 }
 0x20d   :  { %v584_v45 = vpack.c.bf16 %v565_v44, %v564_v43 }
 0x20f   :  { %696 = vmatmul.bf16.gmra.mxu3 %v584_v45 }
 0x210   :  { %v522_v46 = vpop.f32.mrf.mxu2 }
 0x211   :  { %v523_v47 = vadd.f32 %v1762_v32, %v522_v46 }
 0x213   :  { %v566_v50 = vmax.f32 %v523_v47, 0.0 }
 0x218   :  { %v524_v48 = vpop.f32.mrf.mxu2 }
 0x219   :  { %v525_v49 = vadd.f32 %v1762_v32, %v524_v48 }
 0x21b   :  { %v567_v51 = vmax.f32 %v525_v49, 0.0 }
 0x21d   :  { %v585_v52 = vpack.c.bf16 %v567_v51, %v566_v50 }
 0x21f   :  { %701 = vmatmul.bf16.gmra.mxu3 %v585_v52 }
 0x220   :  { %v527_v53 = vpop.f32.mrf.mxu2 }
 0x221   :  { %v528_v54 = vadd.f32 %v1762_v32, %v527_v53 }
 0x223   :  { %v568_v57 = vmax.f32 %v528_v54, 0.0 }
 0x228   :  { %v529_v55 = vpop.f32.mrf.mxu2 }
 0x229   :  { %v530_v56 = vadd.f32 %v1762_v32, %v529_v55 }
 0x22b   :  { %v569_v59 = vmax.f32 %v530_v56, 0.0 }
 0x22d   :  { %v586_v60 = vpack.c.bf16 %v569_v59, %v568_v57 }
 0x22f   :  { %706 = vmatmul.bf16.gmra.mxu3 %v586_v60 }
 0x230   :  { %v532_v61 = vpop.f32.mrf.mxu2 }
 0x231   :  { %v533_v1 = vadd.f32 %v1762_v32, %v532_v61 }
 0x232   :  { %v667_v62 = vpop.f32.mrf.mxu3 }
 0x233   :  { %v1796_v63 = vadd.f32 %v1793_v37, %v667_v62  ;;  %v570_v6 = vmax.f32 %v533_v1, 0.0 }
 0x235   :  { %v761_v0 = vmin.f32 %v1796_v63, 20.0  ;;  %vm735_vm2 = vcmp.gt.f32.partialorder %v1796_v63, 20.0 }
 0x237   :  { %v787_v2 = vmul.f32 1.442695, %v761_v0 }
 0x238   :  { %v534_v3 = vpop.f32.mrf.mxu2 }
 0x239   :  { %1400 = vpow2.f32 %v787_v2  ;;  %v535_v4 = vadd.f32 %v1762_v32, %v534_v3 }
 0x23a   :  { %v669_v5 = vpop.f32.mrf.mxu3 }
 0x23b   :  { %v571_v7 = vmax.f32 %v535_v4, 0.0  ;;  %v670_v8 = vadd.f32 %v1793_v37, %v669_v5 }
 0x23d   :  { %v762_v9 = vmin.f32 %v670_v8, 20.0  ;;  %v587_v10 = vpack.c.bf16 %v571_v7, %v570_v6  ;;  %vm736_vm5 = vcmp.gt.f32.partialorder %v670_v8, 20.0 }
 0x23f   :  { %v1401_v11 = vpop.eup %1400  ;;  %v789_v12 = vmul.f32 1.442695, %v762_v9  ;;  %711 = vmatmul.bf16.gmra.mxu3 %v587_v10 }
 0x240   :  { %v839_v13 = vadd.f32 1.0, %v1401_v11  ;;  %v537_v14 = vpop.f32.mrf.mxu2  ;;  %v842_v17 = vmul.f32 -0.5, %v1401_v11  ;;  %v845_v29 = vand.u32 2147483647, %v1401_v11 }
 0x241   :  { %1402 = vpow2.f32 %v789_v12  ;;  %v538_v20 = vadd.f32 %v1762_v32, %v537_v14 }
 0x242   :  { %1404 = vlog2.f32 %v839_v13  ;;  %v672_v15 = vpop.f32.mrf.mxu3  ;;  %v843_v25 = vadd.f32 1.0, %v842_v17  ;;  %vm846_vm1 = vcmp.lt.f32.partialorder %v845_v29, 0.0004427343 }
 0x243   :  { %v1803_v16 = vadd.f32 %v1793_v37, %v672_v15  ;;  %v572_v31 = vmax.f32 %v538_v20, 0.0 }
 0x244   :  { %v844_v35 = vmul.f32 %v1401_v11, %v843_v25 }
 0x245   :  { %v763_v18 = vmin.f32 %v1803_v16, 20.0  ;;  %vm737_vm7 = vcmp.gt.f32.partialorder %v1803_v16, 20.0 }
 0x247   :  { %v1403_v19 = vpop.eup %1402  ;;  %v791_v21 = vmul.f32 1.442695, %v763_v18 }
 0x248   :  { %v1405_v22 = vpop.eup %1404  ;;  %v848_v23 = vadd.f32 1.0, %v1403_v19  ;;  %v539_v24 = vpop.f32.mrf.mxu2  ;;  %v851_v26 = vmul.f32 -0.5, %v1403_v19  ;;  %v854_v41 = vand.u32 2147483647, %v1403_v19 }
 0x249   :  { %1406 = vpow2.f32 %v791_v21  ;;  %v540_v27 = vadd.f32 %v1762_v32, %v539_v24  ;;  %v841_v30 = vmul.f32 0.6931472, %v1405_v22 }
 0x24a   :  { %1408 = vlog2.f32 %v848_v23  ;;  %v674_v58 = vpop.f32.mrf.mxu3  ;;  %v852_v36 = vadd.f32 1.0, %v851_v26  ;;  %vm855_vm4 = vcmp.lt.f32.partialorder %v854_v41, 0.0004427343 }
 0x24b   :  { %v573_v33 = vmax.f32 %v540_v27, 0.0  ;;  %v1809_v34 = vadd.f32 %v1793_v37, %v674_v58  ;;  %v847_v43 = vsel %vm846_vm1, %v844_v35, %v841_v30 }
 0x24c   :  { %v853_v49 = vmul.f32 %v1403_v19, %v852_v36  ;;  %v1073_v50 = vsel %vm735_vm2, %v1796_v63, %v847_v43 }
 0x24d   :  { %v764_v38 = vmin.f32 %v1809_v34, 20.0  ;;  %v588_v39 = vpack.c.bf16 %v573_v33, %v572_v31  ;;  %v1099_v55 = vsel %vm734_vm3, %v1796_v63, %v1073_v50  ;;  %vm738_vm9 = vcmp.gt.f32.partialorder %v1809_v34, 20.0 }
 0x24f   :  { %v1407_v42 = vpop.eup %1406  ;;  %v793_v44 = vmul.f32 1.442695, %v764_v38  ;;  %716 = vmatmul.bf16.gmra.mxu3 %v588_v39 }
 0x250   :  { %v1409_v45 = vpop.eup %1408  ;;  %v857_v46 = vadd.f32 1.0, %v1407_v42  ;;  %v542_v47 = vpop.f32.mrf.mxu2  ;;  %v860_v57 = vmul.f32 -0.5, %v1407_v42  ;;  %v863_v6 = vand.u32 2147483647, %v1407_v42 }
 0x251   :  { %v850_v48 = vmul.f32 0.6931472, %v1409_v45  ;;  %1410 = vpow2.f32 %v793_v44  ;;  %v543_v62 = vadd.f32 %v1762_v32, %v542_v47 }
 0x252   :  { %1412 = vlog2.f32 %v857_v46  ;;  %v677_v51 = vpop.f32.mrf.mxu3  ;;  %v861_v4 = vadd.f32 1.0, %v860_v57  ;;  %vm864_vm6 = vcmp.lt.f32.partialorder %v863_v6, 0.0004427343 }
 0x253   :  { %v856_v52 = vsel %vm855_vm4, %v853_v49, %v850_v48  ;;  %v1818_v53 = vadd.f32 %v1793_v37, %v677_v51  ;;  %v574_v9 = vmax.f32 %v543_v62, 0.0 }
 0x254   :  { %v1074_v54 = vsel %vm736_vm5, %v670_v8, %v856_v52  ;;  %v862_v12 = vmul.f32 %v1407_v42, %v861_v4 }
 0x255   :  { %v1100_v56 = vsel %vm734_vm3, %v670_v8, %v1074_v54  ;;  %v765_v59 = vmin.f32 %v1818_v53, 20.0  ;;  %vm739_vm11 = vcmp.gt.f32.partialorder %v1818_v53, 20.0 }
 0x256   :  { %v1322_v60 = vpack.c.bf16 %v1100_v56, %v1099_v55 }
 0x257   :  { %v1411_v61 = vpop.eup %1410  ;;  %v795_v0 = vmul.f32 1.442695, %v765_v59 }
 0x258   :  { %v1413_v1 = vpop.eup %1412  ;;  %1323 = vst [vmem:[%s2073_s6] sm:$0xff] %v1322_v60   ;;  %v866_v2 = vadd.f32 1.0, %v1411_v61  ;;  %v544_v3 = vpop.f32.mrf.mxu2  ;;  %v869_v63 = vmul.f32 -0.5, %v1411_v61  ;;  %v872_v17 = vand.u32 2147483647, %v1411_v61 }
 0x259   :  { %1414 = vpow2.f32 %v795_v0  ;;  %v545_v5 = vadd.f32 %v1762_v32, %v544_v3  ;;  %v859_v8 = vmul.f32 0.6931472, %v1413_v1 }
 0x25a   :  { %1416 = vlog2.f32 %v866_v2  ;;  %v679_v7 = vpop.f32.mrf.mxu3  ;;  %v870_v13 = vadd.f32 1.0, %v869_v63  ;;  %vm873_vm8 = vcmp.lt.f32.partialorder %v872_v17, 0.0004427343 }
 0x25b   :  { %v575_v10 = vmax.f32 %v545_v5, 0.0  ;;  %v1832_v11 = vadd.f32 %v1793_v37, %v679_v7  ;;  %v865_v19 = vsel %vm864_vm6, %v862_v12, %v859_v8 }
 0x25c   :  { %v871_v25 = vmul.f32 %v1411_v61, %v870_v13  ;;  %v1075_v26 = vsel %vm737_vm7, %v1803_v16, %v865_v19 }
 0x25d   :  { %v766_v14 = vmin.f32 %v1832_v11, 20.0  ;;  %v589_v15 = vpack.c.bf16 %v575_v10, %v574_v9  ;;  %v1101_v30 = vsel %vm734_vm3, %v1803_v16, %v1075_v26  ;;  %vm740_vm13 = vcmp.gt.f32.partialorder %v1832_v11, 20.0 }
 0x25f   :  { %v1415_v18 = vpop.eup %1414  ;;  %v797_v20 = vmul.f32 1.442695, %v766_v14  ;;  %721 = vmatmul.bf16.gmra.mxu3 %v589_v15 }
 0x260   :  { %v1417_v21 = vpop.eup %1416  ;;  %v875_v22 = vadd.f32 1.0, %v1415_v18  ;;  %v547_v23 = vpop.f32.mrf.mxu2  ;;  %v878_v33 = vmul.f32 -0.5, %v1415_v18  ;;  %v881_v46 = vand.u32 2147483647, %v1415_v18 }
 0x261   :  { %v868_v24 = vmul.f32 0.6931472, %v1417_v21  ;;  %1418 = vpow2.f32 %v797_v20  ;;  %v548_v39 = vadd.f32 %v1762_v32, %v547_v23 }
 0x262   :  { %1420 = vlog2.f32 %v875_v22  ;;  %v682_v27 = vpop.f32.mrf.mxu3  ;;  %v879_v16 = vadd.f32 1.0, %v878_v33  ;;  %vm882_vm10 = vcmp.lt.f32.partialorder %v881_v46, 0.0004427343 }
 0x263   :  { %v874_v28 = vsel %vm873_vm8, %v871_v25, %v868_v24  ;;  %v1839_v29 = vadd.f32 %v1793_v37, %v682_v27  ;;  %v576_v49 = vmax.f32 %v548_v39, 0.0 }
 0x264   :  { %v1076_v58 = vsel %vm738_vm9, %v1809_v34, %v874_v28  ;;  %v880_v52 = vmul.f32 %v1415_v18, %v879_v16 }
 0x265   :  { %v1102_v31 = vsel %vm734_vm3, %v1809_v34, %v1076_v58  ;;  %v767_v35 = vmin.f32 %v1839_v29, 20.0  ;;  %vm741_vm15 = vcmp.gt.f32.partialorder %v1839_v29, 20.0 }
 0x266   :  { %v1327_v36 = vpack.c.bf16 %v1102_v31, %v1101_v30 }
 0x267   :  { %v1419_v38 = vpop.eup %1418  ;;  %v799_v41 = vmul.f32 1.442695, %v767_v35 }
 0x268   :  { %v1421_v42 = vpop.eup %1420  ;;  %1384 = vst [vmem:[%s2073_s6 + $0x8] sm:$0xff] %v1327_v36   ;;  %v884_v43 = vadd.f32 1.0, %v1419_v38  ;;  %v549_v44 = vpop.f32.mrf.mxu2  ;;  %v887_v45 = vmul.f32 -0.5, %v1419_v38  ;;  %v890_v57 = vand.u32 2147483647, %v1419_v38 }
 0x269   :  { %1422 = vpow2.f32 %v799_v41  ;;  %v550_v34 = vadd.f32 %v1762_v32, %v549_v44  ;;  %v877_v48 = vmul.f32 0.6931472, %v1421_v42 }
 0x26a   :  { %1424 = vlog2.f32 %v884_v43  ;;  %v684_v47 = vpop.f32.mrf.mxu3  ;;  %v888_v54 = vadd.f32 1.0, %v887_v45  ;;  %vm891_vm12 = vcmp.lt.f32.partialorder %v890_v57, 0.0004427343 }
 0x26b   :  { %v577_v50 = vmax.f32 %v550_v34, 0.0  ;;  %v1855_v51 = vadd.f32 %v1793_v37, %v684_v47  ;;  %v883_v60 = vsel %vm882_vm10, %v880_v52, %v877_v48 }
 0x26c   :  { %v889_v1 = vmul.f32 %v1419_v38, %v888_v54  ;;  %v1077_v2 = vsel %vm739_vm11, %v1818_v53, %v883_v60 }
 0x26d   :  { %v590_v55 = vpack.c.bf16 %v577_v50, %v576_v49  ;;  %v768_v56 = vmin.f32 %v1855_v51, 20.0  ;;  %v1103_v6 = vsel %vm734_vm3, %v1818_v53, %v1077_v2  ;;  %vm742_vm1 = vcmp.gt.f32.partialorder %v1855_v51, 20.0 }
 0x26f   :  { %v1423_v59 = vpop.eup %1422  ;;  %v801_v61 = vmul.f32 1.442695, %v768_v56  ;;  %726 = vmatmul.bf16.gmra.mxu3 %v590_v55 }
 0x270   :  { %v1425_v32 = vpop.eup %1424  ;;  %v893_v62 = vadd.f32 1.0, %v1423_v59  ;;  %v896_v8 = vmul.f32 -0.5, %v1423_v59  ;;  %v899_v53 = vand.u32 2147483647, %v1423_v59 }
 0x271   :  { %v886_v0 = vmul.f32 0.6931472, %v1425_v32  ;;  %1426 = vpow2.f32 %v801_v61 }
 0x272   :  { %1428 = vlog2.f32 %v893_v62  ;;  %v687_v3 = vpop.f32.mrf.mxu3  ;;  %v897_v17 = vadd.f32 1.0, %v896_v8  ;;  %vm900_vm14 = vcmp.lt.f32.partialorder %v899_v53, 0.0004427343 }
 0x273   :  { %v892_v4 = vsel %vm891_vm12, %v889_v1, %v886_v0  ;;  %v1862_v63 = vadd.f32 %v1793_v37, %v687_v3 }
 0x274   :  { %v1078_v5 = vsel %vm740_vm13, %v1832_v11, %v892_v4  ;;  %v898_v21 = vmul.f32 %v1423_v59, %v897_v17 }
 0x275   :  { %v1104_v7 = vsel %vm734_vm3, %v1832_v11, %v1078_v5  ;;  %v769_v9 = vmin.f32 %v1862_v63, 20.0  ;;  %vm743_vm4 = vcmp.gt.f32.partialorder %v1862_v63, 20.0 }
 0x276   :  { %v1332_v10 = vpack.c.bf16 %v1104_v7, %v1103_v6 }
 0x277   :  { %v1427_v12 = vpop.eup %1426  ;;  %v803_v13 = vmul.f32 1.442695, %v769_v9 }
 0x278   :  { %v1429_v14 = vpop.eup %1428  ;;  %1385 = vst [vmem:[%s2073_s6 + $0x10] sm:$0xff] %v1332_v10   ;;  %v902_v15 = vadd.f32 1.0, %v1427_v12  ;;  %v905_v18 = vmul.f32 -0.5, %v1427_v12  ;;  %v908_v24 = vand.u32 2147483647, %v1427_v12 }
 0x279   :  { %1430 = vpow2.f32 %v803_v13  ;;  %v895_v20 = vmul.f32 0.6931472, %v1429_v14 }
 0x27a   :  { %1432 = vlog2.f32 %v902_v15  ;;  %v689_v19 = vpop.f32.mrf.mxu3  ;;  %v906_v22 = vadd.f32 1.0, %v905_v18  ;;  %vm909_vm0 = vcmp.lt.f32.partialorder %v908_v24, 0.0004427343 }
 0x27b   :  { %v1876_v11 = vadd.f32 %v1793_v37, %v689_v19  ;;  %v901_v26 = vsel %vm900_vm14, %v898_v21, %v895_v20 }
 0x27c   :  { %v907_v31 = vmul.f32 %v1427_v12, %v906_v22  ;;  %v1079_v33 = vsel %vm741_vm15, %v1839_v29, %v901_v26 }
 0x27d   :  { %v770_v23 = vmin.f32 %v1876_v11, 20.0  ;;  %v1105_v41 = vsel %vm734_vm3, %v1839_v29, %v1079_v33  ;;  %vm744_vm6 = vcmp.gt.f32.partialorder %v1876_v11, 20.0 }
 0x27f   :  { %v1431_v25 = vpop.eup %1430  ;;  %v805_v27 = vmul.f32 1.442695, %v770_v23 }
 0x280   :  { %v1433_v28 = vpop.eup %1432  ;;  %v911_v58 = vadd.f32 1.0, %v1431_v25  ;;  %v914_v43 = vmul.f32 -0.5, %v1431_v25  ;;  %v917_v29 = vand.u32 2147483647, %v1431_v25 }
 0x281   :  { %v904_v30 = vmul.f32 0.6931472, %v1433_v28  ;;  %1434 = vpow2.f32 %v805_v27 }
 0x282   :  { %1436 = vlog2.f32 %v911_v58  ;;  %v692_v35 = vpop.f32.mrf.mxu3  ;;  %v915_v48 = vadd.f32 1.0, %v914_v43  ;;  %vm918_vm2 = vcmp.lt.f32.partialorder %v917_v29, 0.0004427343 }
 0x283   :  { %v910_v36 = vsel %vm909_vm0, %v907_v31, %v904_v30  ;;  %v1883_v38 = vadd.f32 %v1793_v37, %v692_v35 }
 0x284   :  { %v1080_v39 = vsel %vm742_vm1, %v1855_v51, %v910_v36  ;;  %v916_v54 = vmul.f32 %v1431_v25, %v915_v48 }
 0x285   :  { %v1106_v42 = vsel %vm734_vm3, %v1855_v51, %v1080_v39  ;;  %v771_v44 = vmin.f32 %v1883_v38, 20.0  ;;  %vm745_vm8 = vcmp.gt.f32.partialorder %v1883_v38, 20.0 }
 0x286   :  { %v1337_v16 = vpack.c.bf16 %v1106_v42, %v1105_v41 }
 0x287   :  { %v1435_v45 = vpop.eup %1434  ;;  %v807_v34 = vmul.f32 1.442695, %v771_v44 }
 0x288   :  { %v1437_v46 = vpop.eup %1436  ;;  %1386 = vst [vmem:[%s2073_s6 + $0x18] sm:$0xff] %v1337_v16   ;;  %v920_v47 = vadd.f32 1.0, %v1435_v45  ;;  %v923_v49 = vmul.f32 -0.5, %v1435_v45  ;;  %v926_v57 = vand.u32 2147483647, %v1435_v45 }
 0x289   :  { %1438 = vpow2.f32 %v807_v34  ;;  %v913_v52 = vmul.f32 0.6931472, %v1437_v46 }
 0x28a   :  { %1440 = vlog2.f32 %v920_v47  ;;  %v694_v50 = vpop.f32.mrf.mxu3  ;;  %v924_v55 = vadd.f32 1.0, %v923_v49  ;;  %vm927_vm5 = vcmp.lt.f32.partialorder %v926_v57, 0.0004427343 }
 0x28b   :  { %v1897_v51 = vadd.f32 %v1793_v37, %v694_v50  ;;  %v919_v60 = vsel %vm918_vm2, %v916_v54, %v913_v52 }
 0x28c   :  { %v925_v1 = vmul.f32 %v1435_v45, %v924_v55  ;;  %v1081_v2 = vsel %vm743_vm4, %v1862_v63, %v919_v60 }
 0x28d   :  { %v772_v56 = vmin.f32 %v1897_v51, 20.0  ;;  %v1107_v7 = vsel %vm734_vm3, %v1862_v63, %v1081_v2  ;;  %vm746_vm10 = vcmp.gt.f32.partialorder %v1897_v51, 20.0 }
 0x28f   :  { %v1439_v59 = vpop.eup %1438  ;;  %v809_v61 = vmul.f32 1.442695, %v772_v56 }
 0x290   :  { %v1441_v32 = vpop.eup %1440  ;;  %v929_v62 = vadd.f32 1.0, %v1439_v59  ;;  %v932_v9 = vmul.f32 -0.5, %v1439_v59  ;;  %v935_v63 = vand.u32 2147483647, %v1439_v59 }
 0x291   :  { %v922_v0 = vmul.f32 0.6931472, %v1441_v32  ;;  %1442 = vpow2.f32 %v809_v61 }
 0x292   :  { %1444 = vlog2.f32 %v929_v62  ;;  %v697_v3 = vpop.f32.mrf.mxu3  ;;  %v933_v18 = vadd.f32 1.0, %v932_v9  ;;  %vm936_vm7 = vcmp.lt.f32.partialorder %v935_v63, 0.0004427343 }
 0x293   :  { %v928_v4 = vsel %vm927_vm5, %v925_v1, %v922_v0  ;;  %v1904_v5 = vadd.f32 %v1793_v37, %v697_v3 }
 0x294   :  { %v1082_v6 = vsel %vm744_vm6, %v1876_v11, %v928_v4  ;;  %v934_v21 = vmul.f32 %v1439_v59, %v933_v18 }
 0x295   :  { %v1108_v8 = vsel %vm734_vm3, %v1876_v11, %v1082_v6  ;;  %v773_v10 = vmin.f32 %v1904_v5, 20.0  ;;  %vm747_vm12 = vcmp.gt.f32.partialorder %v1904_v5, 20.0 }
 0x296   :  { %v1342_v12 = vpack.c.bf16 %v1108_v8, %v1107_v7 }
 0x297   :  { %v1443_v13 = vpop.eup %1442  ;;  %v811_v14 = vmul.f32 1.442695, %v773_v10 }
 0x298   :  { %v1445_v15 = vpop.eup %1444  ;;  %1387 = vst [vmem:[%s2073_s6 + $0x20] sm:$0xff] %v1342_v12   ;;  %v938_v17 = vadd.f32 1.0, %v1443_v13  ;;  %v941_v53 = vmul.f32 -0.5, %v1443_v13  ;;  %v944_v24 = vand.u32 2147483647, %v1443_v13 }
 0x299   :  { %1446 = vpow2.f32 %v811_v14  ;;  %v931_v20 = vmul.f32 0.6931472, %v1445_v15 }
 0x29a   :  { %1448 = vlog2.f32 %v938_v17  ;;  %v699_v19 = vpop.f32.mrf.mxu3  ;;  %v942_v22 = vadd.f32 1.0, %v941_v53  ;;  %vm945_vm9 = vcmp.lt.f32.partialorder %v944_v24, 0.0004427343 }
 0x29b   :  { %v1918_v11 = vadd.f32 %v1793_v37, %v699_v19  ;;  %v937_v26 = vsel %vm936_vm7, %v934_v21, %v931_v20 }
 0x29c   :  { %v943_v31 = vmul.f32 %v1443_v13, %v942_v22  ;;  %v1083_v33 = vsel %vm745_vm8, %v1883_v38, %v937_v26 }
 0x29d   :  { %v774_v23 = vmin.f32 %v1918_v11, 20.0  ;;  %v1109_v42 = vsel %vm734_vm3, %v1883_v38, %v1083_v33  ;;  %vm748_vm14 = vcmp.gt.f32.partialorder %v1918_v11, 20.0 }
 0x29f   :  { %v1447_v25 = vpop.eup %1446  ;;  %v813_v27 = vmul.f32 1.442695, %v774_v23 }
 0x2a0   :  { %v1449_v28 = vpop.eup %1448  ;;  %v947_v58 = vadd.f32 1.0, %v1447_v25  ;;  %v950_v44 = vmul.f32 -0.5, %v1447_v25  ;;  %v953_v38 = vand.u32 2147483647, %v1447_v25 }
 0x2a1   :  { %v940_v30 = vmul.f32 0.6931472, %v1449_v28  ;;  %1450 = vpow2.f32 %v813_v27 }
 0x2a2   :  { %1452 = vlog2.f32 %v947_v58  ;;  %v702_v35 = vpop.f32.mrf.mxu3  ;;  %v951_v49 = vadd.f32 1.0, %v950_v44  ;;  %vm954_vm11 = vcmp.lt.f32.partialorder %v953_v38, 0.0004427343 }
 0x2a3   :  { %v946_v36 = vsel %vm945_vm9, %v943_v31, %v940_v30  ;;  %v1925_v39 = vadd.f32 %v1793_v37, %v702_v35 }
 0x2a4   :  { %v1084_v41 = vsel %vm746_vm10, %v1897_v51, %v946_v36  ;;  %v952_v54 = vmul.f32 %v1447_v25, %v951_v49 }
 0x2a5   :  { %v1110_v43 = vsel %vm734_vm3, %v1897_v51, %v1084_v41  ;;  %v775_v16 = vmin.f32 %v1925_v39, 20.0  ;;  %vm749_vm0 = vcmp.gt.f32.partialorder %v1925_v39, 20.0 }
 0x2a6   :  { %v1347_v45 = vpack.c.bf16 %v1110_v43, %v1109_v42 }
 0x2a7   :  { %v1451_v34 = vpop.eup %1450  ;;  %v815_v46 = vmul.f32 1.442695, %v775_v16 }
 0x2a8   :  { %v1453_v47 = vpop.eup %1452  ;;  %1388 = vst [vmem:[%s2073_s6 + $0x28] sm:$0xff] %v1347_v45   ;;  %v956_v48 = vadd.f32 1.0, %v1451_v34  ;;  %v959_v29 = vmul.f32 -0.5, %v1451_v34  ;;  %v962_v57 = vand.u32 2147483647, %v1451_v34 }
 0x2a9   :  { %1454 = vpow2.f32 %v815_v46  ;;  %v949_v52 = vmul.f32 0.6931472, %v1453_v47 }
 0x2aa   :  { %1456 = vlog2.f32 %v956_v48  ;;  %v704_v50 = vpop.f32.mrf.mxu3  ;;  %v960_v55 = vadd.f32 1.0, %v959_v29  ;;  %vm963_vm13 = vcmp.lt.f32.partialorder %v962_v57, 0.0004427343 }
 0x2ab   :  { %v1939_v51 = vadd.f32 %v1793_v37, %v704_v50  ;;  %v955_v60 = vsel %vm954_vm11, %v952_v54, %v949_v52 }
 0x2ac   :  { %v961_v1 = vmul.f32 %v1451_v34, %v960_v55  ;;  %v1085_v2 = vsel %vm747_vm12, %v1904_v5, %v955_v60 }
 0x2ad   :  { %v776_v56 = vmin.f32 %v1939_v51, 20.0  ;;  %v1111_v8 = vsel %vm734_vm3, %v1904_v5, %v1085_v2  ;;  %vm750_vm2 = vcmp.gt.f32.partialorder %v1939_v51, 20.0 }
 0x2af   :  { %v1455_v59 = vpop.eup %1454  ;;  %v817_v61 = vmul.f32 1.442695, %v776_v56 }
 0x2b0   :  { %v1457_v32 = vpop.eup %1456  ;;  %v965_v62 = vadd.f32 1.0, %v1455_v59  ;;  %v968_v10 = vmul.f32 -0.5, %v1455_v59  ;;  %v971_v5 = vand.u32 2147483647, %v1455_v59 }
 0x2b1   :  { %v958_v0 = vmul.f32 0.6931472, %v1457_v32  ;;  %1458 = vpow2.f32 %v817_v61 }
 0x2b2   :  { %1460 = vlog2.f32 %v965_v62  ;;  %v707_v3 = vpop.f32.mrf.mxu3  ;;  %v969_v53 = vadd.f32 1.0, %v968_v10  ;;  %vm972_vm15 = vcmp.lt.f32.partialorder %v971_v5, 0.0004427343 }
 0x2b3   :  { %v964_v4 = vsel %vm963_vm13, %v961_v1, %v958_v0  ;;  %v1946_v6 = vadd.f32 %v1793_v37, %v707_v3 }
 0x2b4   :  { %v1086_v7 = vsel %vm748_vm14, %v1918_v11, %v964_v4  ;;  %v970_v21 = vmul.f32 %v1455_v59, %v969_v53 }
 0x2b5   :  { %v1112_v9 = vsel %vm734_vm3, %v1918_v11, %v1086_v7  ;;  %v777_v12 = vmin.f32 %v1946_v6, 20.0  ;;  %vm751_vm5 = vcmp.gt.f32.partialorder %v1946_v6, 20.0 }
 0x2b6   :  { %v1352_v13 = vpack.c.bf16 %v1112_v9, %v1111_v8 }
 0x2b7   :  { %v1459_v14 = vpop.eup %1458  ;;  %v819_v15 = vmul.f32 1.442695, %v777_v12 }
 0x2b8   :  { %v1461_v17 = vpop.eup %1460  ;;  %1389 = vst [vmem:[%s2073_s6 + $0x30] sm:$0xff] %v1352_v13   ;;  %v974_v18 = vadd.f32 1.0, %v1459_v14  ;;  %v977_v63 = vmul.f32 -0.5, %v1459_v14  ;;  %v980_v24 = vand.u32 2147483647, %v1459_v14 }
 0x2b9   :  { %1462 = vpow2.f32 %v819_v15  ;;  %v967_v20 = vmul.f32 0.6931472, %v1461_v17 }
 0x2ba   :  { %1464 = vlog2.f32 %v974_v18  ;;  %v709_v19 = vpop.f32.mrf.mxu3  ;;  %v978_v22 = vadd.f32 1.0, %v977_v63  ;;  %vm981_vm1 = vcmp.lt.f32.partialorder %v980_v24, 0.0004427343 }
 0x2bb   :  { %v1960_v11 = vadd.f32 %v1793_v37, %v709_v19  ;;  %v973_v26 = vsel %vm972_vm15, %v970_v21, %v967_v20 }
 0x2bc   :  { %v979_v31 = vmul.f32 %v1459_v14, %v978_v22  ;;  %v1087_v33 = vsel %vm749_vm0, %v1925_v39, %v973_v26 }
 0x2bd   :  { %v778_v23 = vmin.f32 %v1960_v11, 20.0  ;;  %v1113_v43 = vsel %vm734_vm3, %v1925_v39, %v1087_v33  ;;  %vm752_vm7 = vcmp.gt.f32.partialorder %v1960_v11, 20.0 }
 0x2bf   :  { %v1463_v25 = vpop.eup %1462  ;;  %v821_v27 = vmul.f32 1.442695, %v778_v23 }
 0x2c0   :  { %v1465_v28 = vpop.eup %1464  ;;  %v983_v58 = vadd.f32 1.0, %v1463_v25  ;;  %v986_v16 = vmul.f32 -0.5, %v1463_v25  ;;  %v989_v39 = vand.u32 2147483647, %v1463_v25 }
 0x2c1   :  { %v976_v30 = vmul.f32 0.6931472, %v1465_v28  ;;  %1466 = vpow2.f32 %v821_v27 }
 0x2c2   :  { %1468 = vlog2.f32 %v983_v58  ;;  %v712_v35 = vpop.f32.mrf.mxu3  ;;  %v987_v29 = vadd.f32 1.0, %v986_v16  ;;  %vm990_vm4 = vcmp.lt.f32.partialorder %v989_v39, 0.0004427343 }
 0x2c3   :  { %v982_v36 = vsel %vm981_vm1, %v979_v31, %v976_v30  ;;  %v1967_v41 = vadd.f32 %v1793_v37, %v712_v35 }
 0x2c4   :  { %v1088_v42 = vsel %vm750_vm2, %v1939_v51, %v982_v36  ;;  %v988_v54 = vmul.f32 %v1463_v25, %v987_v29 }
 0x2c5   :  { %v1114_v44 = vsel %vm734_vm3, %v1939_v51, %v1088_v42  ;;  %v779_v45 = vmin.f32 %v1967_v41, 20.0  ;;  %vm753_vm9 = vcmp.gt.f32.partialorder %v1967_v41, 20.0 }
 0x2c6   :  { %v1357_v34 = vpack.c.bf16 %v1114_v44, %v1113_v43 }
 0x2c7   :  { %v1467_v46 = vpop.eup %1466  ;;  %v823_v47 = vmul.f32 1.442695, %v779_v45 }
 0x2c8   :  { %v1469_v48 = vpop.eup %1468  ;;  %1390 = vst [vmem:[%s2073_s6 + $0x38] sm:$0xff] %v1357_v34   ;;  %v992_v49 = vadd.f32 1.0, %v1467_v46  ;;  %v995_v38 = vmul.f32 -0.5, %v1467_v46  ;;  %v998_v57 = vand.u32 2147483647, %v1467_v46 }
 0x2c9   :  { %1470 = vpow2.f32 %v823_v47  ;;  %v985_v52 = vmul.f32 0.6931472, %v1469_v48 }
 0x2ca   :  { %1472 = vlog2.f32 %v992_v49  ;;  %v714_v50 = vpop.f32.mrf.mxu3  ;;  %v996_v55 = vadd.f32 1.0, %v995_v38  ;;  %vm999_vm6 = vcmp.lt.f32.partialorder %v998_v57, 0.0004427343 }
 0x2cb   :  { %v1981_v51 = vadd.f32 %v1793_v37, %v714_v50  ;;  %v991_v60 = vsel %vm990_vm4, %v988_v54, %v985_v52 }
 0x2cc   :  { %v997_v1 = vmul.f32 %v1467_v46, %v996_v55  ;;  %v1089_v2 = vsel %vm751_vm5, %v1946_v6, %v991_v60 }
 0x2cd   :  { %v780_v56 = vmin.f32 %v1981_v51, 20.0  ;;  %v1115_v9 = vsel %vm734_vm3, %v1946_v6, %v1089_v2  ;;  %vm754_vm11 = vcmp.gt.f32.partialorder %v1981_v51, 20.0 }
 0x2cf   :  { %v1471_v59 = vpop.eup %1470  ;;  %v825_v61 = vmul.f32 1.442695, %v780_v56 }
 0x2d0   :  { %v1473_v32 = vpop.eup %1472  ;;  %v1001_v62 = vadd.f32 1.0, %v1471_v59  ;;  %v1004_v12 = vmul.f32 -0.5, %v1471_v59  ;;  %v1007_v6 = vand.u32 2147483647, %v1471_v59 }
 0x2d1   :  { %v994_v0 = vmul.f32 0.6931472, %v1473_v32  ;;  %1474 = vpow2.f32 %v825_v61 }
 0x2d2   :  { %1476 = vlog2.f32 %v1001_v62  ;;  %v717_v3 = vpop.f32.mrf.mxu3  ;;  %v1005_v63 = vadd.f32 1.0, %v1004_v12  ;;  %vm1008_vm8 = vcmp.lt.f32.partialorder %v1007_v6, 0.0004427343 }
 0x2d3   :  { %v1000_v4 = vsel %vm999_vm6, %v997_v1, %v994_v0  ;;  %v1988_v7 = vadd.f32 %v1793_v37, %v717_v3 }
 0x2d4   :  { %v1090_v8 = vsel %vm752_vm7, %v1960_v11, %v1000_v4  ;;  %v1006_v21 = vmul.f32 %v1471_v59, %v1005_v63 }
 0x2d5   :  { %v1116_v10 = vsel %vm734_vm3, %v1960_v11, %v1090_v8  ;;  %v781_v13 = vmin.f32 %v1988_v7, 20.0  ;;  %vm755_vm13 = vcmp.gt.f32.partialorder %v1988_v7, 20.0 }
 0x2d6   :  { %v1362_v14 = vpack.c.bf16 %v1116_v10, %v1115_v9 }
 0x2d7   :  { %v1475_v15 = vpop.eup %1474  ;;  %v827_v17 = vmul.f32 1.442695, %v781_v13 }
 0x2d8   :  { %v1477_v18 = vpop.eup %1476  ;;  %1391 = vst [vmem:[%s2073_s6 + $0x40] sm:$0xff] %v1362_v14   ;;  %v1010_v53 = vadd.f32 1.0, %v1475_v15  ;;  %v1013_v5 = vmul.f32 -0.5, %v1475_v15  ;;  %v1016_v24 = vand.u32 2147483647, %v1475_v15 }
 0x2d9   :  { %1478 = vpow2.f32 %v827_v17  ;;  %v1003_v20 = vmul.f32 0.6931472, %v1477_v18 }
 0x2da   :  { %1480 = vlog2.f32 %v1010_v53  ;;  %v719_v19 = vpop.f32.mrf.mxu3  ;;  %v1014_v22 = vadd.f32 1.0, %v1013_v5  ;;  %vm1017_vm10 = vcmp.lt.f32.partialorder %v1016_v24, 0.0004427343 }
 0x2db   :  { %v2002_v11 = vadd.f32 %v1793_v37, %v719_v19  ;;  %v1009_v26 = vsel %vm1008_vm8, %v1006_v21, %v1003_v20 }
 0x2dc   :  { %v1015_v31 = vmul.f32 %v1475_v15, %v1014_v22  ;;  %v1091_v33 = vsel %vm753_vm9, %v1967_v41, %v1009_v26 }
 0x2dd   :  { %v782_v23 = vmin.f32 %v2002_v11, 20.0  ;;  %v1117_v44 = vsel %vm734_vm3, %v1967_v41, %v1091_v33  ;;  %vm756_vm15 = vcmp.gt.f32.partialorder %v2002_v11, 20.0 }
 0x2df   :  { %v1479_v25 = vpop.eup %1478  ;;  %v829_v27 = vmul.f32 1.442695, %v782_v23 }
 0x2e0   :  { %v1481_v28 = vpop.eup %1480  ;;  %v1019_v58 = vadd.f32 1.0, %v1479_v25  ;;  %v1022_v45 = vmul.f32 -0.5, %v1479_v25  ;;  %v1025_v41 = vand.u32 2147483647, %v1479_v25 }
 0x2e1   :  { %v1012_v30 = vmul.f32 0.6931472, %v1481_v28  ;;  %1482 = vpow2.f32 %v829_v27 }
 0x2e2   :  { %1484 = vlog2.f32 %v1019_v58  ;;  %v722_v35 = vpop.f32.mrf.mxu3  ;;  %v1023_v38 = vadd.f32 1.0, %v1022_v45  ;;  %vm1026_vm12 = vcmp.lt.f32.partialorder %v1025_v41, 0.0004427343 }
 0x2e3   :  { %v1018_v36 = vsel %vm1017_vm10, %v1015_v31, %v1012_v30  ;;  %v2009_v42 = vadd.f32 %v1793_v37, %v722_v35 }
 0x2e4   :  { %v1092_v43 = vsel %vm754_vm11, %v1981_v51, %v1018_v36  ;;  %v1024_v54 = vmul.f32 %v1479_v25, %v1023_v38 }
 0x2e5   :  { %v1118_v16 = vsel %vm734_vm3, %v1981_v51, %v1092_v43  ;;  %v783_v34 = vmin.f32 %v2009_v42, 20.0  ;;  %vm757_vm1 = vcmp.gt.f32.partialorder %v2009_v42, 20.0 }
 0x2e6   :  { %v1367_v46 = vpack.c.bf16 %v1118_v16, %v1117_v44 }
 0x2e7   :  { %v1483_v47 = vpop.eup %1482  ;;  %v831_v48 = vmul.f32 1.442695, %v783_v34 }
 0x2e8   :  { %v1485_v49 = vpop.eup %1484  ;;  %1392 = vst [vmem:[%s2073_s6 + $0x48] sm:$0xff] %v1367_v46   ;;  %v1028_v29 = vadd.f32 1.0, %v1483_v47  ;;  %v1031_v39 = vmul.f32 -0.5, %v1483_v47  ;;  %v1034_v57 = vand.u32 2147483647, %v1483_v47 }
 0x2e9   :  { %1486 = vpow2.f32 %v831_v48  ;;  %v1021_v52 = vmul.f32 0.6931472, %v1485_v49 }
 0x2ea   :  { %1488 = vlog2.f32 %v1028_v29  ;;  %v724_v50 = vpop.f32.mrf.mxu3  ;;  %v1032_v55 = vadd.f32 1.0, %v1031_v39  ;;  %vm1035_vm14 = vcmp.lt.f32.partialorder %v1034_v57, 0.0004427343 }
 0x2eb   :  { %v2023_v51 = vadd.f32 %v1793_v37, %v724_v50  ;;  %v1027_v60 = vsel %vm1026_vm12, %v1024_v54, %v1021_v52 }
 0x2ec   :  { %v1033_v1 = vmul.f32 %v1483_v47, %v1032_v55  ;;  %v1093_v2 = vsel %vm755_vm13, %v1988_v7, %v1027_v60 }
 0x2ed   :  { %v784_v56 = vmin.f32 %v2023_v51, 20.0  ;;  %v1119_v10 = vsel %vm734_vm3, %v1988_v7, %v1093_v2  ;;  %vm758_vm4 = vcmp.gt.f32.partialorder %v2023_v51, 20.0 }
 0x2ef   :  { %v1487_v59 = vpop.eup %1486  ;;  %v833_v61 = vmul.f32 1.442695, %v784_v56 }
 0x2f0   :  { %v1489_v32 = vpop.eup %1488  ;;  %v1037_v62 = vadd.f32 1.0, %v1487_v59  ;;  %v1040_v13 = vmul.f32 -0.5, %v1487_v59  ;;  %v1043_v7 = vand.u32 2147483647, %v1487_v59 }
 0x2f1   :  { %v1030_v0 = vmul.f32 0.6931472, %v1489_v32  ;;  %1490 = vpow2.f32 %v833_v61 }
 0x2f2   :  { %1492 = vlog2.f32 %v1037_v62  ;;  %v727_v3 = vpop.f32.mrf.mxu3  ;;  %v1041_v5 = vadd.f32 1.0, %v1040_v13  ;;  %vm1044_vm0 = vcmp.lt.f32.partialorder %v1043_v7, 0.0004427343 }
 0x2f3   :  { %v1036_v4 = vsel %vm1035_vm14, %v1033_v1, %v1030_v0  ;;  %v2030_v8 = vadd.f32 %v1793_v37, %v727_v3 }
 0x2f4   :  { %v1094_v9 = vsel %vm756_vm15, %v2002_v11, %v1036_v4  ;;  %v1042_v21 = vmul.f32 %v1487_v59, %v1041_v5 }
 0x2f5   :  { %v1120_v12 = vsel %vm734_vm3, %v2002_v11, %v1094_v9  ;;  %v785_v14 = vmin.f32 %v2030_v8, 20.0  ;;  %vm759_vm6 = vcmp.gt.f32.partialorder %v2030_v8, 20.0 }
 0x2f6   :  { %v1372_v15 = vpack.c.bf16 %v1120_v12, %v1119_v10 }
 0x2f7   :  { %v1491_v17 = vpop.eup %1490  ;;  %v835_v18 = vmul.f32 1.442695, %v785_v14 }
 0x2f8   :  { %v1493_v53 = vpop.eup %1492  ;;  %1393 = vst [vmem:[%s2073_s6 + $0x50] sm:$0xff] %v1372_v15   ;;  %v1046_v63 = vadd.f32 1.0, %v1491_v17  ;;  %v1049_v6 = vmul.f32 -0.5, %v1491_v17  ;;  %v1052_v24 = vand.u32 2147483647, %v1491_v17 }
 0x2f9   :  { %1494 = vpow2.f32 %v835_v18  ;;  %v1039_v20 = vmul.f32 0.6931472, %v1493_v53 }
 0x2fa   :  { %1496 = vlog2.f32 %v1046_v63  ;;  %v729_v19 = vpop.f32.mrf.mxu3  ;;  %v1050_v22 = vadd.f32 1.0, %v1049_v6  ;;  %vm1053_vm2 = vcmp.lt.f32.partialorder %v1052_v24, 0.0004427343 }
 0x2fb   :  { %v730_v11 = vadd.f32 %v1793_v37, %v729_v19  ;;  %v1045_v26 = vsel %vm1044_vm0, %v1042_v21, %v1039_v20 }
 0x2fc   :  { %v1051_v31 = vmul.f32 %v1491_v17, %v1050_v22  ;;  %v1095_v33 = vsel %vm757_vm1, %v2009_v42, %v1045_v26 }
 0x2fd   :  { %v786_v23 = vmin.f32 %v730_v11, 20.0  ;;  %v1121_v36 = vsel %vm734_vm3, %v2009_v42, %v1095_v33  ;;  %vm760_vm8 = vcmp.gt.f32.partialorder %v730_v11, 20.0 }
 0x2ff   :  { %v1495_v25 = vpop.eup %1494  ;;  %v837_v27 = vmul.f32 1.442695, %v786_v23 }
 0x300   :  { %v1497_v28 = vpop.eup %1496  ;;  %v1055_v58 = vadd.f32 1.0, %v1495_v25  ;;  %v1058_v44 = vmul.f32 -0.5, %v1495_v25  ;;  %v1061_v49 = vand.u32 2147483647, %v1495_v25 }
 0x301   :  { %v1048_v30 = vmul.f32 0.6931472, %v1497_v28  ;;  %1498 = vpow2.f32 %v837_v27 }
 0x302   :  { %1500 = vlog2.f32 %v1055_v58  ;;  %v1059_v47 = vadd.f32 1.0, %v1058_v44  ;;  %vm1062_vm5 = vcmp.lt.f32.partialorder %v1061_v49, 0.0004427343 }
 0x303   :  { %v1054_v37 = vsel %vm1053_vm2, %v1051_v31, %v1048_v30 }
 0x304   :  { %v1096_v35 = vsel %vm758_vm4, %v2023_v51, %v1054_v37  ;;  %v1060_v38 = vmul.f32 %v1495_v25, %v1059_v47 }
 0x305   :  { %v1122_v43 = vsel %vm734_vm3, %v2023_v51, %v1096_v35 }
 0x306   :  { %v1377_v16 = vpack.c.bf16 %v1122_v43, %v1121_v36 }
 0x307   :  { %v1499_v45 = vpop.eup %1498 }
 0x308   :  { %v1501_v34 = vpop.eup %1500  ;;  %1394 = vst [vmem:[%s2073_s6 + $0x58] sm:$0xff] %v1377_v16   ;;  %v1064_v46 = vadd.f32 1.0, %v1499_v45  ;;  %v1067_v48 = vmul.f32 -0.5, %v1499_v45  ;;  %v1070_v39 = vand.u32 2147483647, %v1499_v45 }
 0x309   :  { %v1057_v29 = vmul.f32 0.6931472, %v1501_v34 }
 0x30a   :  { %1502 = vlog2.f32 %v1064_v46  ;;  %v1068_v42 = vadd.f32 1.0, %v1067_v48  ;;  %vm1071_vm7 = vcmp.lt.f32.partialorder %v1070_v39, 0.0004427343 }
 0x30b   :  { %v1063_v41 = vsel %vm1062_vm5, %v1060_v38, %v1057_v29 }
 0x30c   :  { %v1069_v51 = vmul.f32 %v1499_v45, %v1068_v42  ;;  %v1097_v54 = vsel %vm759_vm6, %v2030_v8, %v1063_v41 }
 0x30d   :  { %v1123_v57 = vsel %vm734_vm3, %v2030_v8, %v1097_v54 }
 0x310   :  { %v1503_v50 = vpop.eup %1502 }
 0x311   :  { %v1066_v52 = vmul.f32 0.6931472, %v1503_v50 }
 0x313   :  { %v1072_v55 = vsel %vm1071_vm7, %v1069_v51, %v1066_v52 }
 0x314   :  { %v1098_v56 = vsel %vm760_vm8, %v730_v11, %v1072_v55 }
 0x315   :  { %v1124_v59 = vsel %vm734_vm3, %v730_v11, %v1098_v56 }
 0x316   :  { %v1382_v60 = vpack.c.bf16 %v1124_v59, %v1123_v57 }
 0x318   :  { %1395 = vst [vmem:[%s2073_s6 + $0x60] sm:$0xff] %v1382_v60  }

</bundles_post_ra>
